<compile_context>
chip_gen: v6e
topology: v6e:2x2x1
jax: 0.10.0
libtpu: 0.0.40
codegen_flags: <defaults>
</compile_context>

<pallas_src>
from functools import partial

import jax
import jax.numpy as jnp
from jax.experimental import pallas as pl
from jax.experimental.pallas import tpu as pltpu

BN_EPS = 1e-5
LANE = 128           # padded width for hidden dims H0, H1 and the output lanes

# Row indices into the packed (24, 128) bias / folded-BN table.
R_BR1, R_BG1, R_BL1, R_BB1 = 0, 1, 2, 3
R_BN21_S, R_BN21_T, R_BN22_S, R_BN22_T = 4, 5, 6, 7
R_BR2, R_BG2, R_BQL2 = 8, 9, 10
R_BN3_S, R_BN3_T = 11, 12
R_BR3, R_BG3, R_BL3, R_BB3 = 13, 14, 15, 16
R_BN41_S, R_BN41_T, R_BN42_S, R_BN42_T = 17, 18, 19, 20
R_BR4, R_BG4, R_BQL4 = 21, 22, 23
NUM_VEC_ROWS = 24


def _round_up(n, m):
    return (n + m - 1) // m * m


def _hae_kernel(x_ref, vin_ref, w1_ref, wb1_ref, w2_ref, w2b_ref,
                w3f_ref, w4_ref, w4b_ref, vec_ref, o_ref):
    f32 = jnp.float32
    H = LANE

    def v(row):                       # (1, 128) bias/scale row, broadcasts over batch
        return vec_ref[row:row + 1, :]

    def mm(a, w_ref):                 # f32 MXU matmul, f32 accumulation
        return jnp.dot(a, w_ref[...], preferred_element_type=f32)

    relu = lambda h: jnp.maximum(h, 0.0)

    # ---- input BatchNorm (eval mode, folded) at native feature width F ----
    x = x_ref[...].astype(f32) * vin_ref[0:1, :] + vin_ref[1:2, :]

    # ---- stage 1: encq1 (quadratic) || enc1 (linear); same-LHS weights fused ----
    a1 = mm(x, w1_ref)                # (TB, 384) = x @ [Wr | Wg | Wlin]
    q1 = mm(x * x, wb1_ref)           # (TB, 128) = x^2 @ Wb
    r1 = a1[:, 0:H] + v(R_BR1)
    g1 = a1[:, H:2 * H] + v(R_BG1)
    l1 = a1[:, 2 * H:3 * H] + v(R_BL1)
    y11 = relu(r1 * g1 + q1 + v(R_BB1))
    y12 = relu(l1)
    y11 = y11 * v(R_BN21_S) + v(R_BN21_T)            # bn21 (folded)
    y12 = y12 * v(R_BN22_S) + v(R_BN22_T)            # bn22 (folded)

    # ---- stage 2: encq2(y11) + enc2(y12) ----
    a2 = mm(y11, w2_ref)                             # (TB, 256) = y11 @ [Wr | Wg]
    s2 = mm(jnp.concatenate([y11 * y11, y12], axis=1), w2b_ref)  # y11^2@Wb + y12@Wlin
    r2 = a2[:, 0:H] + v(R_BR2)
    g2 = a2[:, H:2 * H] + v(R_BG2)
    enc = relu(r2 * g2 + s2 + v(R_BQL2))
    enc = enc * v(R_BN3_S) + v(R_BN3_T)              # bn3 (folded)

    # ---- stage 3: decq1 (quadratic) || dec1 (linear), one fused K=256 matmul ----
    #   [enc | enc^2] @ [[Wr|Wg|Wlin|0],[0|0|0|Wb]]   (fills 256-deep MXU on v6e/v7x)
    a3 = mm(jnp.concatenate([enc, enc * enc], axis=1), w3f_ref)   # (TB, 512)
    r3 = a3[:, 0:H] + v(R_BR3)
    g3 = a3[:, H:2 * H] + v(R_BG3)
    l3 = a3[:, 2 * H:3 * H] + v(R_BL3)
    q3 = a3[:, 3 * H:4 * H]
    y31 = relu(r3 * g3 + q3 + v(R_BB3))
    y32 = relu(l3)
    y31 = y31 * v(R_BN41_S) + v(R_BN41_T)            # bn41 (folded)
    y32 = y32 * v(R_BN42_S) + v(R_BN42_T)            # bn42 (folded)

    # ---- stage 4: decq2(y31) + dec2(y32), sigmoid ----
    a4 = mm(y31, w4_ref)                             # (TB, 256) = y31 @ [Wr | Wg]
    s4 = mm(jnp.concatenate([y31 * y31, y32], axis=1), w4b_ref)  # y31^2@Wb + y32@Wlin
    r4 = a4[:, 0:H] + v(R_BR4)
    g4 = a4[:, H:2 * H] + v(R_BG4)
    y4 = r4 * g4 + s4 + v(R_BQL4)
    o_ref[...] = jax.nn.sigmoid(y4).astype(o_ref.dtype)

    # TODO(synk): training-mode Dropout (stochastic masking) and BatchNorm batch-stat
    # updates are not expressed here; forward implements eval-mode semantics.


@partial(jax.jit, static_argnames=("out_dtype",))
def hae_forward(x, packed, out_dtype=jnp.float32):
    B, F = x.shape

    # Batch tiling: up to 512 rows per tile, and >= 2 grid steps whenever the batch
    # allows so the "parallel" axis can use both v7x TensorCores.
    Br = _round_up(max(B, 1), 8)
    if Br <= 8:
        TB = Br
    else:
        TB = min(512, _round_up((Br + 1) // 2, 8))
    B_pad = _round_up(Br, TB)

    x = x.astype(jnp.float32)
    if B_pad != B:
        x_in = jnp.zeros((B_pad, F), jnp.float32).at[:B, :].set(x)
    else:
        x_in = x

    const_names = ("vin", "w1", "wb1", "w2", "w2b", "w3f", "w4", "w4b", "vec")
    consts = [packed[k] for k in const_names]
    # Whole-array blocks with constant index maps -> fetched once, VMEM-resident.
    const_specs = [pl.BlockSpec(c.shape, lambda i: (0, 0)) for c in consts]

    out = pl.pallas_call(
        _hae_kernel,
        out_shape=jax.ShapeDtypeStruct((B_pad, LANE), out_dtype),
        grid=(B_pad // TB,),
        in_specs=[pl.BlockSpec((TB, F), lambda i: (i, 0))] + const_specs,
        out_specs=pl.BlockSpec((TB, LANE), lambda i: (i, 0)),
        compiler_params=pltpu.CompilerParams(dimension_semantics=("parallel",)),
    )(x_in, *consts)
    return out[:B, :F]


# ----------------------------------------------------------------------------
# Host-side parameter construction / packing (BN folding + weight fusion + padding).
# ----------------------------------------------------------------------------
def init_params(key, n_features, h0, h1):
    """Deterministic synthetic parameters matching the module's __init__ shapes."""
    params = {}
    keys = iter(jax.random.split(key, 128))

    def wmat(din, dout):
        return 0.1 * jax.random.normal(next(keys), (din, dout), jnp.float32)

    def vec(d):
        return 0.05 * jax.random.normal(next(keys), (1, d), jnp.float32)

    def add_quad(pre, din, dout):
        params[pre + "_wr"] = wmat(din, dout); params[pre + "_br"] = vec(dout)
        params[pre + "_wg"] = wmat(din, dout); params[pre + "_bg"] = vec(dout)
        params[pre + "_wb"] = wmat(din, dout); params[pre + "_bb"] = vec(dout)

    def add_lin(pre, din, dout):
        params[pre + "_w"] = wmat(din, dout); params[pre + "_b"] = vec(dout)

    def add_bn(pre, d):
        params[pre + "_g"] = 1.0 + 0.1 * jax.random.normal(next(keys), (1, d), jnp.float32)
        params[pre + "_b"] = 0.05 * jax.random.normal(next(keys), (1, d), jnp.float32)
        params[pre + "_m"] = 0.05 * jax.random.normal(next(keys), (1, d), jnp.float32)
        params[pre + "_v"] = 0.5 + jnp.abs(jax.random.normal(next(keys), (1, d), jnp.float32))

    add_bn("bn1", n_features)
    add_quad("encq1", n_features, h0)
    add_lin("enc1", n_features, h0)
    add_bn("bn21", h0)
    add_bn("bn22", h0)
    add_quad("encq2", h0, h1)
    add_lin("enc2", h0, h1)
    add_bn("bn3", h1)
    add_quad("decq1", h1, h0)
    add_lin("dec1", h1, h0)
    add_bn("bn41", h0)
    add_bn("bn42", h0)
    add_quad("decq2", h0, n_features)
    add_lin("dec2", h0, n_features)
    return params


def pack_params(params):
    """Fold eval-mode BNs, fuse same-LHS weights, zero-pad hidden dims to 128 lanes."""
    F, H0 = params["encq1_wr"].shape
    H1 = params["encq2_wr"].shape[1]
    H = LANE
    assert F <= H and H0 <= H and H1 <= H, "dims must be <= 128 for this packing"

    def zpad(w, rows, cols):
        out = jnp.zeros((rows, cols), jnp.float32)
        return out.at[:w.shape[0], :w.shape[1]].set(w.astype(jnp.float32))

    def pv(v):
        v = jnp.asarray(v, jnp.float32).reshape(-1)
        out = jnp.zeros((H,), jnp.float32)
        return out.at[:v.shape[0]].set(v)

    def bn_fold(pre):
        s = params[pre + "_g"] * jax.lax.rsqrt(params[pre + "_v"] + BN_EPS)
        t = params[pre + "_b"] - params[pre + "_m"] * s
        return s.reshape(-1), t.reshape(-1)

    # --- weights (all f32; zero-padded blocks keep garbage lanes dead) ---
    w1 = jnp.concatenate([zpad(params["encq1_wr"], F, H),
                          zpad(params["encq1_wg"], F, H),
                          zpad(params["enc1_w"], F, H)], axis=1)          # (F, 384)
    wb1 = zpad(params["encq1_wb"], F, H)                                  # (F, 128)

    w2 = jnp.concatenate([zpad(params["encq2_wr"], H, H),
                          zpad(params["encq2_wg"], H, H)], axis=1)        # (128, 256)
    w2b = jnp.concatenate([zpad(params["encq2_wb"], H, H),
                           zpad(params["enc2_w"], H, H)], axis=0)         # (256, 128)

    top = jnp.concatenate([zpad(params["decq1_wr"], H, H),
                           zpad(params["decq1_wg"], H, H),
                           zpad(params["dec1_w"], H, H),
                           jnp.zeros((H, H), jnp.float32)], axis=1)
    bot = jnp.concatenate([jnp.zeros((H, 3 * H), jnp.float32),
                           zpad(params["decq1_wb"], H, H)], axis=1)
    w3f = jnp.concatenate([top, bot], axis=0)                             # (256, 512)

    w4 = jnp.concatenate([zpad(params["decq2_wr"], H, H),
                          zpad(params["decq2_wg"], H, H)], axis=1)        # (128, 256)
    w4b = jnp.concatenate([zpad(params["decq2_wb"], H, H),
                           zpad(params["dec2_w"], H, H)], axis=0)         # (256, 128)

    # --- folded BN + bias table ---
    bn1_s, bn1_t = bn_fold("bn1")
    vin = jnp.zeros((8, F), jnp.float32).at[0, :].set(bn1_s).at[1, :].set(bn1_t)

    bn21_s, bn21_t = bn_fold("bn21")
    bn22_s, bn22_t = bn_fold("bn22")
    bn3_s, bn3_t = bn_fold("bn3")
    bn41_s, bn41_t = bn_fold("bn41")
    bn42_s, bn42_t = bn_fold("bn42")

    rows = [
        pv(params["encq1_br"]), pv(params["encq1_bg"]),
        pv(params["enc1_b"]), pv(params["encq1_bb"]),
        pv(bn21_s), pv(bn21_t), pv(bn22_s), pv(bn22_t),
        pv(params["encq2_br"]), pv(params["encq2_bg"]),
        pv(params["encq2_bb"] + params["enc2_b"]),
        pv(bn3_s), pv(bn3_t),
        pv(params["decq1_br"]), pv(params["decq1_bg"]),
        pv(params["dec1_b"]), pv(params["decq1_bb"]),
        pv(bn41_s), pv(bn41_t), pv(bn42_s), pv(bn42_t),
        pv(params["decq2_br"]), pv(params["decq2_bg"]),
        pv(params["decq2_bb"] + params["dec2_b"]),
    ]
    assert len(rows) == NUM_VEC_ROWS
    vec = jnp.stack(rows)                                                 # (24, 128)

    return {"vin": vin, "w1": w1, "wb1": wb1, "w2": w2, "w2b": w2b,
            "w3f": w3f, "w4": w4, "w4b": w4b, "vec": vec}


def hae_reference(x, params):
    """Pure-JAX f32 reference (unfused, unfolded), highest-precision matmuls."""
    p = params
    hi = jax.lax.Precision.HIGHEST
    dot = lambda a, b: jnp.dot(a, b, precision=hi)

    def bn(h, pre):
        return ((h - p[pre + "_m"]) * jax.lax.rsqrt(p[pre + "_v"] + BN_EPS)
                * p[pre + "_g"] + p[pre + "_b"])

    def quad(h, pre):
        return ((dot(h, p[pre + "_wr"]) + p[pre + "_br"])
                * (dot(h, p[pre + "_wg"]) + p[pre + "_bg"])
                + dot(h * h, p[pre + "_wb"]) + p[pre + "_bb"])

    def lin(h, pre):
        return dot(h, p[pre + "_w"]) + p[pre + "_b"]

    relu = lambda h: jnp.maximum(h, 0.0)
    x = bn(x, "bn1")
    y11 = bn(relu(quad(x, "encq1")), "bn21")
    y12 = bn(relu(lin(x, "enc1")), "bn22")
    encoded = bn(relu(quad(y11, "encq2") + lin(y12, "enc2")), "bn3")
    y31 = bn(relu(quad(encoded, "decq1")), "bn41")
    y32 = bn(relu(lin(encoded, "dec1")), "bn42")
    return jax.nn.sigmoid(quad(y31, "decq2") + lin(y32, "dec2"))


if __name__ == "__main__":
    # Small shapes consistent with the module: n_features=32, hidden=[128, 64].
    B, N_FEATURES, H0, H1 = 8, 32, 128, 64

    key = jax.random.PRNGKey(0)
    kx, kp = jax.random.split(key)
    x = jax.random.normal(kx, (B, N_FEATURES), jnp.float32)
    params = init_params(kp, N_FEATURES, H0, H1)
    packed = pack_params(params)

    out = hae_forward(x, packed)                 # default out_dtype = f32
    out = jax.block_until_ready(out)

    ref = hae_reference(x, params)
    assert out.shape == (B, N_FEATURES)
    max_err = float(jnp.max(jnp.abs(out - ref)))
    assert not jnp.any(jnp.isnan(out))
    # f32 matmul operands on both sides: typically ~1e-5.  The 5e-2 bound keeps
    # headroom for a worst-case reduced-precision (single bf16 pass) MXU lowering.
    assert max_err < 5e-2, f"mismatch vs JAX reference: max abs err = {max_err}"

    print("KERNEL_OK")
</pallas_src>

<mosaic_0001>
module attributes {stable_mosaic.version = 11 : i64} {
  func.func @_hae_kernel(%arg0: i32, %arg1: memref<8x32xf32, #tpu.memory_space<vmem>>, %arg2: memref<8x32xf32, #tpu.memory_space<vmem>>, %arg3: memref<32x384xf32, #tpu.memory_space<vmem>>, %arg4: memref<32x128xf32, #tpu.memory_space<vmem>>, %arg5: memref<128x256xf32, #tpu.memory_space<vmem>>, %arg6: memref<256x128xf32, #tpu.memory_space<vmem>>, %arg7: memref<256x512xf32, #tpu.memory_space<vmem>>, %arg8: memref<128x256xf32, #tpu.memory_space<vmem>>, %arg9: memref<256x128xf32, #tpu.memory_space<vmem>>, %arg10: memref<24x128xf32, #tpu.memory_space<vmem>>, %arg11: memref<8x128xf32, #tpu.memory_space<vmem>>) attributes {dimension_semantics = [#tpu.dimension_semantics<parallel>], iteration_bounds = array<i64: 1>, scalar_prefetch = 0 : i64, scratch_operands = 0 : i64, tpu.core_type = #tpu.core_type<tc>, window_params = [{transform_indices = @transform_0, window_bounds = array<i64: 8, 32>}, {pipeline_mode = #tpu.pipeline_mode<synchronous>, transform_indices = @transform_1, window_bounds = array<i64: 8, 32>}, {pipeline_mode = #tpu.pipeline_mode<synchronous>, transform_indices = @transform_2, window_bounds = array<i64: 32, 384>}, {pipeline_mode = #tpu.pipeline_mode<synchronous>, transform_indices = @transform_3, window_bounds = array<i64: 32, 128>}, {pipeline_mode = #tpu.pipeline_mode<synchronous>, transform_indices = @transform_4, window_bounds = array<i64: 128, 256>}, {pipeline_mode = #tpu.pipeline_mode<synchronous>, transform_indices = @transform_5, window_bounds = array<i64: 256, 128>}, {pipeline_mode = #tpu.pipeline_mode<synchronous>, transform_indices = @transform_6, window_bounds = array<i64: 256, 512>}, {pipeline_mode = #tpu.pipeline_mode<synchronous>, transform_indices = @transform_7, window_bounds = array<i64: 128, 256>}, {pipeline_mode = #tpu.pipeline_mode<synchronous>, transform_indices = @transform_8, window_bounds = array<i64: 256, 128>}, {pipeline_mode = #tpu.pipeline_mode<synchronous>, transform_indices = @transform_9, window_bounds = array<i64: 24, 128>}, {transform_indices = @transform_10, window_bounds = array<i64: 8, 128>}]} {
    %c0 = arith.constant 0 : index
    %c0_0 = arith.constant 0 : index
    %0 = vector.load %arg1[%c0, %c0_0] : memref<8x32xf32, #tpu.memory_space<vmem>>, vector<8x32xf32>
    %c0_1 = arith.constant 0 : index
    %c0_2 = arith.constant 0 : index
    %1 = vector.load %arg2[%c0_1, %c0_2] : memref<8x32xf32, #tpu.memory_space<vmem>>, vector<1x32xf32>
    %2 = vector.broadcast %1 : vector<1x32xf32> to vector<8x32xf32>
    %3 = arith.mulf %0, %2 : vector<8x32xf32>
    %c1 = arith.constant 1 : index
    %c0_3 = arith.constant 0 : index
    %4 = vector.load %arg2[%c1, %c0_3] : memref<8x32xf32, #tpu.memory_space<vmem>>, vector<1x32xf32>
    %5 = vector.broadcast %4 : vector<1x32xf32> to vector<8x32xf32>
    %6 = arith.addf %3, %5 : vector<8x32xf32>
    %c0_4 = arith.constant 0 : index
    %c0_5 = arith.constant 0 : index
    %7 = vector.load %arg3[%c0_4, %c0_5] : memref<32x384xf32, #tpu.memory_space<vmem>>, vector<32x384xf32>
    %cst = arith.constant dense<0.000000e+00> : vector<8x384xf32>
    %8 = tpu.matmul %6, %7, %cst {dimension_numbers = #tpu.dot_dimension_numbers<[1], [0], [0], [1], [0, 0, 1, 1], [], []>} : vector<8x32xf32>, vector<32x384xf32>, vector<8x384xf32> -> vector<8x384xf32>
    %9 = arith.mulf %6, %6 : vector<8x32xf32>
    %c0_6 = arith.constant 0 : index
    %c0_7 = arith.constant 0 : index
    %10 = vector.load %arg4[%c0_6, %c0_7] : memref<32x128xf32, #tpu.memory_space<vmem>>, vector<32x128xf32>
    %cst_8 = arith.constant dense<0.000000e+00> : vector<8x128xf32>
    %11 = tpu.matmul %9, %10, %cst_8 {dimension_numbers = #tpu.dot_dimension_numbers<[1], [0], [0], [1], [0, 0, 1, 1], [], []>} : vector<8x32xf32>, vector<32x128xf32>, vector<8x128xf32> -> vector<8x128xf32>
    %12 = vector.extract_strided_slice %8 {offsets = [0, 0], sizes = [8, 128], strides = [1, 1]} : vector<8x384xf32> to vector<8x128xf32>
    %c0_9 = arith.constant 0 : index
    %c0_10 = arith.constant 0 : index
    %13 = vector.load %arg10[%c0_9, %c0_10] : memref<24x128xf32, #tpu.memory_space<vmem>>, vector<1x128xf32>
    %14 = vector.broadcast %13 : vector<1x128xf32> to vector<8x128xf32>
    %15 = arith.addf %12, %14 : vector<8x128xf32>
    %16 = vector.extract_strided_slice %8 {offsets = [0, 128], sizes = [8, 128], strides = [1, 1]} : vector<8x384xf32> to vector<8x128xf32>
    %c1_11 = arith.constant 1 : index
    %c0_12 = arith.constant 0 : index
    %17 = vector.load %arg10[%c1_11, %c0_12] : memref<24x128xf32, #tpu.memory_space<vmem>>, vector<1x128xf32>
    %18 = vector.broadcast %17 : vector<1x128xf32> to vector<8x128xf32>
    %19 = arith.addf %16, %18 : vector<8x128xf32>
    %20 = vector.extract_strided_slice %8 {offsets = [0, 256], sizes = [8, 128], strides = [1, 1]} : vector<8x384xf32> to vector<8x128xf32>
    %c2 = arith.constant 2 : index
    %c0_13 = arith.constant 0 : index
    %21 = vector.load %arg10[%c2, %c0_13] : memref<24x128xf32, #tpu.memory_space<vmem>>, vector<1x128xf32>
    %22 = vector.broadcast %21 : vector<1x128xf32> to vector<8x128xf32>
    %23 = arith.addf %20, %22 : vector<8x128xf32>
    %24 = arith.mulf %15, %19 : vector<8x128xf32>
    %25 = arith.addf %24, %11 : vector<8x128xf32>
    %c3 = arith.constant 3 : index
    %c0_14 = arith.constant 0 : index
    %26 = vector.load %arg10[%c3, %c0_14] : memref<24x128xf32, #tpu.memory_space<vmem>>, vector<1x128xf32>
    %27 = vector.broadcast %26 : vector<1x128xf32> to vector<8x128xf32>
    %28 = arith.addf %25, %27 : vector<8x128xf32>
    %cst_15 = arith.constant 0.000000e+00 : f32
    %29 = vector.broadcast %cst_15 : f32 to vector<8x128xf32>
    %30 = arith.maximumf %28, %29 : vector<8x128xf32>
    %cst_16 = arith.constant 0.000000e+00 : f32
    %31 = vector.broadcast %cst_16 : f32 to vector<8x128xf32>
    %32 = arith.maximumf %23, %31 : vector<8x128xf32>
    %c4 = arith.constant 4 : index
    %c0_17 = arith.constant 0 : index
    %33 = vector.load %arg10[%c4, %c0_17] : memref<24x128xf32, #tpu.memory_space<vmem>>, vector<1x128xf32>
    %34 = vector.broadcast %33 : vector<1x128xf32> to vector<8x128xf32>
    %35 = arith.mulf %30, %34 : vector<8x128xf32>
    %c5 = arith.constant 5 : index
    %c0_18 = arith.constant 0 : index
    %36 = vector.load %arg10[%c5, %c0_18] : memref<24x128xf32, #tpu.memory_space<vmem>>, vector<1x128xf32>
    %37 = vector.broadcast %36 : vector<1x128xf32> to vector<8x128xf32>
    %38 = arith.addf %35, %37 : vector<8x128xf32>
    %c6 = arith.constant 6 : index
    %c0_19 = arith.constant 0 : index
    %39 = vector.load %arg10[%c6, %c0_19] : memref<24x128xf32, #tpu.memory_space<vmem>>, vector<1x128xf32>
    %40 = vector.broadcast %39 : vector<1x128xf32> to vector<8x128xf32>
    %41 = arith.mulf %32, %40 : vector<8x128xf32>
    %c7 = arith.constant 7 : index
    %c0_20 = arith.constant 0 : index
    %42 = vector.load %arg10[%c7, %c0_20] : memref<24x128xf32, #tpu.memory_space<vmem>>, vector<1x128xf32>
    %43 = vector.broadcast %42 : vector<1x128xf32> to vector<8x128xf32>
    %44 = arith.addf %41, %43 : vector<8x128xf32>
    %c0_21 = arith.constant 0 : index
    %c0_22 = arith.constant 0 : index
    %45 = vector.load %arg5[%c0_21, %c0_22] : memref<128x256xf32, #tpu.memory_space<vmem>>, vector<128x256xf32>
    %cst_23 = arith.constant dense<0.000000e+00> : vector<8x256xf32>
    %46 = tpu.matmul %38, %45, %cst_23 {dimension_numbers = #tpu.dot_dimension_numbers<[1], [0], [0], [1], [0, 0, 1, 1], [], []>} : vector<8x128xf32>, vector<128x256xf32>, vector<8x256xf32> -> vector<8x256xf32>
    %47 = arith.mulf %38, %38 : vector<8x128xf32>
    %48 = tpu.concatenate %47, %44 in 1 : vector<8x128xf32>, vector<8x128xf32> -> vector<8x256xf32>
    %c0_24 = arith.constant 0 : index
    %c0_25 = arith.constant 0 : index
    %49 = vector.load %arg6[%c0_24, %c0_25] : memref<256x128xf32, #tpu.memory_space<vmem>>, vector<256x128xf32>
    %cst_26 = arith.constant dense<0.000000e+00> : vector<8x128xf32>
    %50 = tpu.matmul %48, %49, %cst_26 {dimension_numbers = #tpu.dot_dimension_numbers<[1], [0], [0], [1], [0, 0, 1, 1], [], []>} : vector<8x256xf32>, vector<256x128xf32>, vector<8x128xf32> -> vector<8x128xf32>
    %51 = vector.extract_strided_slice %46 {offsets = [0, 0], sizes = [8, 128], strides = [1, 1]} : vector<8x256xf32> to vector<8x128xf32>
    %c8 = arith.constant 8 : index
    %c0_27 = arith.constant 0 : index
    %52 = vector.load %arg10[%c8, %c0_27] : memref<24x128xf32, #tpu.memory_space<vmem>>, vector<1x128xf32>
    %53 = vector.broadcast %52 : vector<1x128xf32> to vector<8x128xf32>
    %54 = arith.addf %51, %53 : vector<8x128xf32>
    %55 = vector.extract_strided_slice %46 {offsets = [0, 128], sizes = [8, 128], strides = [1, 1]} : vector<8x256xf32> to vector<8x128xf32>
    %c9 = arith.constant 9 : index
    %c0_28 = arith.constant 0 : index
    %56 = vector.load %arg10[%c9, %c0_28] : memref<24x128xf32, #tpu.memory_space<vmem>>, vector<1x128xf32>
    %57 = vector.broadcast %56 : vector<1x128xf32> to vector<8x128xf32>
    %58 = arith.addf %55, %57 : vector<8x128xf32>
    %59 = arith.mulf %54, %58 : vector<8x128xf32>
    %60 = arith.addf %59, %50 : vector<8x128xf32>
    %c10 = arith.constant 10 : index
    %c0_29 = arith.constant 0 : index
    %61 = vector.load %arg10[%c10, %c0_29] : memref<24x128xf32, #tpu.memory_space<vmem>>, vector<1x128xf32>
    %62 = vector.broadcast %61 : vector<1x128xf32> to vector<8x128xf32>
    %63 = arith.addf %60, %62 : vector<8x128xf32>
    %cst_30 = arith.constant 0.000000e+00 : f32
    %64 = vector.broadcast %cst_30 : f32 to vector<8x128xf32>
    %65 = arith.maximumf %63, %64 : vector<8x128xf32>
    %c11 = arith.constant 11 : index
    %c0_31 = arith.constant 0 : index
    %66 = vector.load %arg10[%c11, %c0_31] : memref<24x128xf32, #tpu.memory_space<vmem>>, vector<1x128xf32>
    %67 = vector.broadcast %66 : vector<1x128xf32> to vector<8x128xf32>
    %68 = arith.mulf %65, %67 : vector<8x128xf32>
    %c12 = arith.constant 12 : index
    %c0_32 = arith.constant 0 : index
    %69 = vector.load %arg10[%c12, %c0_32] : memref<24x128xf32, #tpu.memory_space<vmem>>, vector<1x128xf32>
    %70 = vector.broadcast %69 : vector<1x128xf32> to vector<8x128xf32>
    %71 = arith.addf %68, %70 : vector<8x128xf32>
    %72 = arith.mulf %71, %71 : vector<8x128xf32>
    %73 = tpu.concatenate %71, %72 in 1 : vector<8x128xf32>, vector<8x128xf32> -> vector<8x256xf32>
    %c0_33 = arith.constant 0 : index
    %c0_34 = arith.constant 0 : index
    %74 = vector.load %arg7[%c0_33, %c0_34] : memref<256x512xf32, #tpu.memory_space<vmem>>, vector<256x512xf32>
    %cst_35 = arith.constant dense<0.000000e+00> : vector<8x512xf32>
    %75 = tpu.matmul %73, %74, %cst_35 {dimension_numbers = #tpu.dot_dimension_numbers<[1], [0], [0], [1], [0, 0, 1, 1], [], []>} : vector<8x256xf32>, vector<256x512xf32>, vector<8x512xf32> -> vector<8x512xf32>
    %76 = vector.extract_strided_slice %75 {offsets = [0, 0], sizes = [8, 128], strides = [1, 1]} : vector<8x512xf32> to vector<8x128xf32>
    %c13 = arith.constant 13 : index
    %c0_36 = arith.constant 0 : index
    %77 = vector.load %arg10[%c13, %c0_36] : memref<24x128xf32, #tpu.memory_space<vmem>>, vector<1x128xf32>
    %78 = vector.broadcast %77 : vector<1x128xf32> to vector<8x128xf32>
    %79 = arith.addf %76, %78 : vector<8x128xf32>
    %80 = vector.extract_strided_slice %75 {offsets = [0, 128], sizes = [8, 128], strides = [1, 1]} : vector<8x512xf32> to vector<8x128xf32>
    %c14 = arith.constant 14 : index
    %c0_37 = arith.constant 0 : index
    %81 = vector.load %arg10[%c14, %c0_37] : memref<24x128xf32, #tpu.memory_space<vmem>>, vector<1x128xf32>
    %82 = vector.broadcast %81 : vector<1x128xf32> to vector<8x128xf32>
    %83 = arith.addf %80, %82 : vector<8x128xf32>
    %84 = vector.extract_strided_slice %75 {offsets = [0, 256], sizes = [8, 128], strides = [1, 1]} : vector<8x512xf32> to vector<8x128xf32>
    %c15 = arith.constant 15 : index
    %c0_38 = arith.constant 0 : index
    %85 = vector.load %arg10[%c15, %c0_38] : memref<24x128xf32, #tpu.memory_space<vmem>>, vector<1x128xf32>
    %86 = vector.broadcast %85 : vector<1x128xf32> to vector<8x128xf32>
    %87 = arith.addf %84, %86 : vector<8x128xf32>
    %88 = vector.extract_strided_slice %75 {offsets = [0, 384], sizes = [8, 128], strides = [1, 1]} : vector<8x512xf32> to vector<8x128xf32>
    %89 = arith.mulf %79, %83 : vector<8x128xf32>
    %90 = arith.addf %89, %88 : vector<8x128xf32>
    %c16 = arith.constant 16 : index
    %c0_39 = arith.constant 0 : index
    %91 = vector.load %arg10[%c16, %c0_39] : memref<24x128xf32, #tpu.memory_space<vmem>>, vector<1x128xf32>
    %92 = vector.broadcast %91 : vector<1x128xf32> to vector<8x128xf32>
    %93 = arith.addf %90, %92 : vector<8x128xf32>
    %cst_40 = arith.constant 0.000000e+00 : f32
    %94 = vector.broadcast %cst_40 : f32 to vector<8x128xf32>
    %95 = arith.maximumf %93, %94 : vector<8x128xf32>
    %cst_41 = arith.constant 0.000000e+00 : f32
    %96 = vector.broadcast %cst_41 : f32 to vector<8x128xf32>
    %97 = arith.maximumf %87, %96 : vector<8x128xf32>
    %c17 = arith.constant 17 : index
    %c0_42 = arith.constant 0 : index
    %98 = vector.load %arg10[%c17, %c0_42] : memref<24x128xf32, #tpu.memory_space<vmem>>, vector<1x128xf32>
    %99 = vector.broadcast %98 : vector<1x128xf32> to vector<8x128xf32>
    %100 = arith.mulf %95, %99 : vector<8x128xf32>
    %c18 = arith.constant 18 : index
    %c0_43 = arith.constant 0 : index
    %101 = vector.load %arg10[%c18, %c0_43] : memref<24x128xf32, #tpu.memory_space<vmem>>, vector<1x128xf32>
    %102 = vector.broadcast %101 : vector<1x128xf32> to vector<8x128xf32>
    %103 = arith.addf %100, %102 : vector<8x128xf32>
    %c19 = arith.constant 19 : index
    %c0_44 = arith.constant 0 : index
    %104 = vector.load %arg10[%c19, %c0_44] : memref<24x128xf32, #tpu.memory_space<vmem>>, vector<1x128xf32>
    %105 = vector.broadcast %104 : vector<1x128xf32> to vector<8x128xf32>
    %106 = arith.mulf %97, %105 : vector<8x128xf32>
    %c20 = arith.constant 20 : index
    %c0_45 = arith.constant 0 : index
    %107 = vector.load %arg10[%c20, %c0_45] : memref<24x128xf32, #tpu.memory_space<vmem>>, vector<1x128xf32>
    %108 = vector.broadcast %107 : vector<1x128xf32> to vector<8x128xf32>
    %109 = arith.addf %106, %108 : vector<8x128xf32>
    %c0_46 = arith.constant 0 : index
    %c0_47 = arith.constant 0 : index
    %110 = vector.load %arg8[%c0_46, %c0_47] : memref<128x256xf32, #tpu.memory_space<vmem>>, vector<128x256xf32>
    %cst_48 = arith.constant dense<0.000000e+00> : vector<8x256xf32>
    %111 = tpu.matmul %103, %110, %cst_48 {dimension_numbers = #tpu.dot_dimension_numbers<[1], [0], [0], [1], [0, 0, 1, 1], [], []>} : vector<8x128xf32>, vector<128x256xf32>, vector<8x256xf32> -> vector<8x256xf32>
    %112 = arith.mulf %103, %103 : vector<8x128xf32>
    %113 = tpu.concatenate %112, %109 in 1 : vector<8x128xf32>, vector<8x128xf32> -> vector<8x256xf32>
    %c0_49 = arith.constant 0 : index
    %c0_50 = arith.constant 0 : index
    %114 = vector.load %arg9[%c0_49, %c0_50] : memref<256x128xf32, #tpu.memory_space<vmem>>, vector<256x128xf32>
    %cst_51 = arith.constant dense<0.000000e+00> : vector<8x128xf32>
    %115 = tpu.matmul %113, %114, %cst_51 {dimension_numbers = #tpu.dot_dimension_numbers<[1], [0], [0], [1], [0, 0, 1, 1], [], []>} : vector<8x256xf32>, vector<256x128xf32>, vector<8x128xf32> -> vector<8x128xf32>
    %116 = vector.extract_strided_slice %111 {offsets = [0, 0], sizes = [8, 128], strides = [1, 1]} : vector<8x256xf32> to vector<8x128xf32>
    %c21 = arith.constant 21 : index
    %c0_52 = arith.constant 0 : index
    %117 = vector.load %arg10[%c21, %c0_52] : memref<24x128xf32, #tpu.memory_space<vmem>>, vector<1x128xf32>
    %118 = vector.broadcast %117 : vector<1x128xf32> to vector<8x128xf32>
    %119 = arith.addf %116, %118 : vector<8x128xf32>
    %120 = vector.extract_strided_slice %111 {offsets = [0, 128], sizes = [8, 128], strides = [1, 1]} : vector<8x256xf32> to vector<8x128xf32>
    %c22 = arith.constant 22 : index
    %c0_53 = arith.constant 0 : index
    %121 = vector.load %arg10[%c22, %c0_53] : memref<24x128xf32, #tpu.memory_space<vmem>>, vector<1x128xf32>
    %122 = vector.broadcast %121 : vector<1x128xf32> to vector<8x128xf32>
    %123 = arith.addf %120, %122 : vector<8x128xf32>
    %124 = arith.mulf %119, %123 : vector<8x128xf32>
    %125 = arith.addf %124, %115 : vector<8x128xf32>
    %c23 = arith.constant 23 : index
    %c0_54 = arith.constant 0 : index
    %126 = vector.load %arg10[%c23, %c0_54] : memref<24x128xf32, #tpu.memory_space<vmem>>, vector<1x128xf32>
    %127 = vector.broadcast %126 : vector<1x128xf32> to vector<8x128xf32>
    %128 = arith.addf %125, %127 : vector<8x128xf32>
    %129 = arith.negf %128 : vector<8x128xf32>
    %130 = math.exp %129 : vector<8x128xf32>
    %cst_55 = arith.constant 1.000000e+00 : f32
    %131 = vector.broadcast %cst_55 : f32 to vector<8x128xf32>
    %132 = arith.addf %131, %130 : vector<8x128xf32>
    %133 = arith.divf %131, %132 : vector<8x128xf32>
    %c0_56 = arith.constant 0 : index
    %c0_57 = arith.constant 0 : index
    %134 = vector.load %arg11[%c0_56, %c0_57] : memref<8x128xf32, #tpu.memory_space<vmem>>, vector<8x128xf32>
    tpu.vector_store %arg11[%c0_56, %c0_57], %133 {strides = array<i32>} : memref<8x128xf32, #tpu.memory_space<vmem>>, vector<8x128xf32>,
    return
  }
  func.func @transform_0(%arg0: i32) -> (i32, i32) {
    %c0_i32 = arith.constant 0 : i32
    %c0_i32_0 = arith.constant 0 : i32
    return %arg0, %c0_i32 : i32, i32
  }
  func.func @transform_1(%arg0: i32) -> (i32, i32) {
    %c0_i32 = arith.constant 0 : i32
    %c0_i32_0 = arith.constant 0 : i32
    %c0_i32_1 = arith.constant 0 : i32
    return %c0_i32, %c0_i32_0 : i32, i32
  }
  func.func @transform_2(%arg0: i32) -> (i32, i32) {
    %c0_i32 = arith.constant 0 : i32
    %c0_i32_0 = arith.constant 0 : i32
    %c0_i32_1 = arith.constant 0 : i32
    return %c0_i32, %c0_i32_0 : i32, i32
  }
  func.func @transform_3(%arg0: i32) -> (i32, i32) {
    %c0_i32 = arith.constant 0 : i32
    %c0_i32_0 = arith.constant 0 : i32
    %c0_i32_1 = arith.constant 0 : i32
    return %c0_i32, %c0_i32_0 : i32, i32
  }
  func.func @transform_4(%arg0: i32) -> (i32, i32) {
    %c0_i32 = arith.constant 0 : i32
    %c0_i32_0 = arith.constant 0 : i32
    %c0_i32_1 = arith.constant 0 : i32
    return %c0_i32, %c0_i32_0 : i32, i32
  }
  func.func @transform_5(%arg0: i32) -> (i32, i32) {
    %c0_i32 = arith.constant 0 : i32
    %c0_i32_0 = arith.constant 0 : i32
    %c0_i32_1 = arith.constant 0 : i32
    return %c0_i32, %c0_i32_0 : i32, i32
  }
  func.func @transform_6(%arg0: i32) -> (i32, i32) {
    %c0_i32 = arith.constant 0 : i32
    %c0_i32_0 = arith.constant 0 : i32
    %c0_i32_1 = arith.constant 0 : i32
    return %c0_i32, %c0_i32_0 : i32, i32
  }
  func.func @transform_7(%arg0: i32) -> (i32, i32) {
    %c0_i32 = arith.constant 0 : i32
    %c0_i32_0 = arith.constant 0 : i32
    %c0_i32_1 = arith.constant 0 : i32
    return %c0_i32, %c0_i32_0 : i32, i32
  }
  func.func @transform_8(%arg0: i32) -> (i32, i32) {
    %c0_i32 = arith.constant 0 : i32
    %c0_i32_0 = arith.constant 0 : i32
    %c0_i32_1 = arith.constant 0 : i32
    return %c0_i32, %c0_i32_0 : i32, i32
  }
  func.func @transform_9(%arg0: i32) -> (i32, i32) {
    %c0_i32 = arith.constant 0 : i32
    %c0_i32_0 = arith.constant 0 : i32
    %c0_i32_1 = arith.constant 0 : i32
    return %c0_i32, %c0_i32_0 : i32, i32
  }
  func.func @transform_10(%arg0: i32) -> (i32, i32) {
    %c0_i32 = arith.constant 0 : i32
    %c0_i32_0 = arith.constant 0 : i32
    return %arg0, %c0_i32 : i32, i32
  }
}

</mosaic_0001>

<bundles_post_ra>
// kernel: hae_forward.1
= control target key start
LH: loop header
LB: loop body
LE: loop exit
PB: predicated region body
PF: predicated region fallthrough
CT: control target
= control target key end

     0   :  { %15 = vsyncpa [#allocation3], 0  ;;  %s1819_s0 = inlined_call_operand.hbm [shape: f32[8,32], index: 0, kind: input, shape index: {}]   ;;  %s1820_s1 = inlined_call_operand.hbm [shape: f32[8,32], index: 1, kind: input, shape index: {}]   ;;  %s1821_s2 = inlined_call_operand.hbm [shape: f32[32,384], index: 2, kind: input, shape index: {}]   ;;  %s1822_s3 = inlined_call_operand.hbm [shape: f32[32,128], index: 3, kind: input, shape index: {}]   ;;  %s1823_s4 = inlined_call_operand.hbm [shape: f32[128,256], index: 4, kind: input, shape index: {}]   ;;  %s1824_s5 = inlined_call_operand.hbm [shape: f32[256,128], index: 5, kind: input, shape index: {}]   ;;  %s1825_s6 = inlined_call_operand.hbm [shape: f32[256,512], index: 6, kind: input, shape index: {}]   ;;  %s1826_s7 = inlined_call_operand.hbm [shape: f32[128,256], index: 7, kind: input, shape index: {}]   ;;  %s1827_s8 = inlined_call_operand.hbm [shape: f32[256,128], index: 8, kind: input, shape index: {}]   ;;  %s1828_s9 = inlined_call_operand.hbm [shape: f32[24,128], index: 9, kind: input, shape index: {}]   ;;  %s1829_s10 = inlined_call_operand.hbm [shape: f32[8,128], index: 10, kind: output, shape index: {}]  }
   0x1   :  { %16 = vsyncpa [#allocation6], 0 }
   0x2   :  { %17 = vsyncpa [#allocation9], 0 }
   0x3   :  { %18 = vsyncpa [#allocation12], 0 }
   0x4   :  { %19 = vsyncpa [#allocation15], 0 }
   0x5   :  { %20 = vsyncpa [#allocation18], 0 }
   0x6   :  { %21 = vsyncpa [#allocation4], 0  ;;  %s1674_s13 = smov [#allocation5]   ;;  %s1675_s15 = smov [#allocation8]  }
   0x7   :  { %s38_s14 = sshll.u32 %s1674_s13, 4  ;;  %s59_s16 = sshll.u32 %s1675_s15, 4  ;;  %s39_s14 = int_to_ptr.vmem [resolvable:$true] %s38_s14  ;;  %s60_s16 = int_to_ptr.vmem [resolvable:$true] %s59_s16 }
   0x8   :  { %s1448_s17 = scalar_lea.vmem %s39_s14, 128  ;;  %p1453_p1 = scmp.lt.s32.totalorder %s39_s14, %s39_s14 }
   0x9   :  { %p1449_p0 = scmp.ne.s32.totalorder %s39_s14, %s1448_s17  ;;  %p1454_p2 = scmp.lt.s32.totalorder %s1448_s17, %s1448_s17 }
   0xb   :  { %p1455_p3 = por %p1454_p2, %p1453_p1 }
   0xd   :  { %p1456_p4 = pnand %p1455_p3, %p1449_p0 }
   0xf   :  { %1459 = shalt.err (!%p1456_p4)
}
  0x10   :  { %41 = dma.hbm_to_vmem [thread:$0]  %s1820_s1, 128, %s39_s14, [#allocation6]  }
  0x11   :  { %s1468_s20 = scalar_lea.vmem %s60_s16, 512  ;;  %p1473_p6 = scmp.lt.s32.totalorder %s60_s16, %s60_s16 }
  0x12   :  { %p1469_p5 = scmp.ne.s32.totalorder %s60_s16, %s1468_s20  ;;  %p1474_p7 = scmp.lt.s32.totalorder %s1468_s20, %s1468_s20 }
  0x14   :  { %p1475_p8 = por %p1474_p7, %p1473_p6 }
  0x16   :  { %p1476_p9 = pnand %p1475_p8, %p1469_p5 }
  0x18   :  { %1479 = shalt.err (!%p1476_p9)
}
  0x19   :  { %s1676_s21 = smov 128   ;;  %s1677_s22 = smov 8  }
  0x1a   :  { %65 = dma.hbm_to_vmem [thread:$0]  %s1822_s3, 512, %s60_s16, [#allocation9], %s1676_s21, %s1676_s21, %s1677_s22  }
  0x1b   :  { %s1678_s25 = smov [#allocation11]  }
  0x1c   :  { %s83_s26 = sshll.u32 %s1678_s25, 4  ;;  %s84_s26 = int_to_ptr.vmem [resolvable:$true] %s83_s26 }
  0x1d   :  { %s1488_s1 = scalar_lea.vmem %s84_s26, 4096  ;;  %p1493_p11 = scmp.lt.s32.totalorder %s84_s26, %s84_s26 }
  0x1e   :  { %p1489_p10 = scmp.ne.s32.totalorder %s84_s26, %s1488_s1  ;;  %p1494_p12 = scmp.lt.s32.totalorder %s1488_s1, %s1488_s1 }
  0x20   :  { %p1495_p13 = por %p1494_p12, %p1493_p11 }
  0x22   :  { %p1496_p0 = pnand %p1495_p13, %p1489_p10 }
  0x24   :  { %1499 = shalt.err (!%p1496_p0)
}
  0x25   :  { %89 = dma.hbm_to_vmem [thread:$0]  %s1824_s5, 4096, %s84_s26, [#allocation12], %s1676_s21, %s1676_s21, %s1677_s22  }
  0x26   :  { %s1679_s29 = smov [#allocation14]   ;;  %s1680_s3 = smov [#allocation2]  }
  0x27   :  { %s107_s30 = sshll.u32 %s1679_s29, 4  ;;  %s28_s11 = sshll.u32 %s1680_s3, 4  ;;  %s108_s30 = int_to_ptr.vmem [resolvable:$true] %s107_s30  ;;  %s29_s11 = int_to_ptr.vmem [resolvable:$true] %s28_s11 }
  0x28   :  { %s1508_s12 = scalar_lea.vmem %s108_s30, 4096  ;;  %p1513_p2 = scmp.lt.s32.totalorder %s108_s30, %s108_s30 }
  0x29   :  { %p1509_p1 = scmp.ne.s32.totalorder %s108_s30, %s1508_s12  ;;  %p1514_p3 = scmp.lt.s32.totalorder %s1508_s12, %s1508_s12 }
  0x2b   :  { %p1515_p4 = por %p1514_p3, %p1513_p2 }
  0x2d   :  { %p1516_p5 = pnand %p1515_p4, %p1509_p1 }
  0x2f   :  { %1519 = shalt.err (!%p1516_p5)
}
  0x30   :  { %s1681_s13 = smov 256   ;;  %s1682_s14 = smov 16  }
  0x31   :  { %113 = dma.hbm_to_vmem [thread:$0]  %s1826_s7, 4096, %s108_s30, [#allocation15], %s1681_s13, %s1681_s13, %s1682_s14  }
  0x32   :  { %s1528_s5 = scalar_lea.vmem %s29_s11, 128  ;;  %p1533_p7 = scmp.lt.s32.totalorder %s29_s11, %s29_s11 }
  0x33   :  { %p1529_p6 = scmp.ne.s32.totalorder %s29_s11, %s1528_s5  ;;  %p1534_p8 = scmp.lt.s32.totalorder %s1528_s5, %s1528_s5 }
  0x35   :  { %p1535_p9 = por %p1534_p8, %p1533_p7 }
  0x37   :  { %p1536_p10 = pnand %p1535_p9, %p1529_p6 }
  0x39   :  { %1539 = shalt.err (!%p1536_p10)
}
  0x3a   :  { %31 = dma.hbm_to_vmem [thread:$0]  %s1819_s0, 128, %s29_s11, [#allocation3]  }
  0x3b   :  { %s1683_s19 = smov [#allocation7]  }
  0x3c   :  { %s47_s20 = sshll.u32 %s1683_s19, 4  ;;  %s48_s20 = int_to_ptr.vmem [resolvable:$true] %s47_s20 }
  0x3d   :  { %s1548_s23 = scalar_lea.vmem %s48_s20, 1536  ;;  %p1553_p12 = scmp.lt.s32.totalorder %s48_s20, %s48_s20 }
  0x3e   :  { %p1549_p11 = scmp.ne.s32.totalorder %s48_s20, %s1548_s23  ;;  %p1554_p13 = scmp.lt.s32.totalorder %s1548_s23, %s1548_s23 }
  0x40   :  { %p1555_p0 = por %p1554_p13, %p1553_p12 }
  0x42   :  { %p1556_p1 = pnand %p1555_p0, %p1549_p11 }
  0x44   :  { %1559 = shalt.err (!%p1556_p1)
}
  0x45   :  { %s1684_s7 = smov 384   ;;  %s1685_s24 = smov 24  }
  0x46   :  { %53 = dma.hbm_to_vmem [thread:$0]  %s1821_s2, 1536, %s48_s20, [#allocation6], %s1684_s7, %s1684_s7, %s1685_s24  }
  0x47   :  { %s1686_s1 = smov [#allocation10]   ;;  %s1687_s28 = smov [#allocation13]  }
  0x48   :  { %s71_s27 = sshll.u32 %s1686_s1, 4  ;;  %s95_s0 = sshll.u32 %s1687_s28, 4  ;;  %s72_s27 = int_to_ptr.vmem [resolvable:$true] %s71_s27  ;;  %s96_s0 = int_to_ptr.vmem [resolvable:$true] %s95_s0 }
  0x49   :  { %s1568_s29 = scalar_lea.vmem %s72_s27, 4096  ;;  %p1573_p3 = scmp.lt.s32.totalorder %s72_s27, %s72_s27 }
  0x4a   :  { %p1569_p2 = scmp.ne.s32.totalorder %s72_s27, %s1568_s29  ;;  %p1574_p4 = scmp.lt.s32.totalorder %s1568_s29, %s1568_s29 }
  0x4c   :  { %p1575_p5 = por %p1574_p4, %p1573_p3 }
  0x4e   :  { %p1576_p6 = pnand %p1575_p5, %p1569_p2 }
  0x50   :  { %1579 = shalt.err (!%p1576_p6)
}
  0x51   :  { %77 = dma.hbm_to_vmem [thread:$0]  %s1823_s4, 4096, %s72_s27, [#allocation9], %s1681_s13, %s1681_s13, %s1682_s14  }
  0x52   :  { %s1588_s2 = scalar_lea.vmem %s96_s0, 16384  ;;  %p1593_p8 = scmp.lt.s32.totalorder %s96_s0, %s96_s0 }
  0x53   :  { %p1589_p7 = scmp.ne.s32.totalorder %s96_s0, %s1588_s2  ;;  %p1594_p9 = scmp.lt.s32.totalorder %s1588_s2, %s1588_s2 }
  0x55   :  { %p1595_p10 = por %p1594_p9, %p1593_p8 }
  0x57   :  { %p1596_p11 = pnand %p1595_p10, %p1589_p7 }
  0x59   :  { %1599 = shalt.err (!%p1596_p11)
}
  0x5a   :  { %s1688_s11 = smov 512   ;;  %s1689_s12 = smov 32  }
  0x5b   :  { %101 = dma.hbm_to_vmem [thread:$0]  %s1825_s6, 16384, %s96_s0, [#allocation12], %s1688_s11, %s1688_s11, %s1689_s12  }
  0x5c   :  { %s1690_s5 = smov [#allocation16]   ;;  %s1691_s18 = smov [#allocation17]  }
  0x5d   :  { %s119_s17 = sshll.u32 %s1690_s5, 4  ;;  %s131_s19 = sshll.u32 %s1691_s18, 4  ;;  %s120_s17 = int_to_ptr.vmem [resolvable:$true] %s119_s17  ;;  %s132_s19 = int_to_ptr.vmem [resolvable:$true] %s131_s19 }
  0x5e   :  { %s1608_s4 = scalar_lea.vmem %s120_s17, 4096  ;;  %p1613_p13 = scmp.lt.s32.totalorder %s120_s17, %s120_s17 }
  0x5f   :  { %p1609_p12 = scmp.ne.s32.totalorder %s120_s17, %s1608_s4  ;;  %p1614_p0 = scmp.lt.s32.totalorder %s1608_s4, %s1608_s4 }
  0x61   :  { %p1615_p1 = por %p1614_p0, %p1613_p13 }
  0x63   :  { %p1616_p2 = pnand %p1615_p1, %p1609_p12 }
  0x65   :  { %1619 = shalt.err (!%p1616_p2)
}
  0x66   :  { %125 = dma.hbm_to_vmem [thread:$0]  %s1827_s8, 4096, %s120_s17, [#allocation15], %s1676_s21, %s1676_s21, %s1677_s22  }
  0x67   :  { %s1628_s6 = scalar_lea.vmem %s132_s19, 384  ;;  %p1633_p4 = scmp.lt.s32.totalorder %s132_s19, %s132_s19 }
  0x68   :  { %p1629_p3 = scmp.ne.s32.totalorder %s132_s19, %s1628_s6  ;;  %p1634_p5 = scmp.lt.s32.totalorder %s1628_s6, %s1628_s6 }
  0x6a   :  { %p1635_p6 = por %p1634_p5, %p1633_p4 }
  0x6c   :  { %p1636_p7 = pnand %p1635_p6, %p1629_p3 }
  0x6e   :  { %1639 = shalt.err (!%p1636_p7)
}
  0x6f   :  { %137 = dma.hbm_to_vmem [thread:$0]  %s1828_s9, 384, %s132_s19, [#allocation18], %s1676_s21, %s1676_s21, %s1677_s22  }
  0x70   :  { %1660 = dma.done.wait [#allocation3], 128  }
  0x71   :  { %1661 = vsyncadd [#allocation3], 4294967168 }
  0x72   :  { %1662 = dma.done.wait [#allocation6], 1664  }
  0x73   :  { %1663 = vsyncadd [#allocation6], 4294965632 }
  0x74   :  { %1664 = dma.done.wait [#allocation9], 4608  }
  0x75   :  { %1665 = vsyncadd [#allocation9], 4294962688 }
  0x76   :  { %1666 = dma.done.wait [#allocation12], 20480  }
  0x77   :  { %1667 = vsyncadd [#allocation12], 4294946816 }
  0x78   :  { %1668 = dma.done.wait [#allocation15], 8192  }
  0x79   :  { %1669 = vsyncadd [#allocation15], 4294959104 }
  0x7a   :  { %1670 = dma.done.wait [#allocation18], 384  }
  0x7b   :  { %1671 = vsyncadd [#allocation18], 4294966912  ;;  %v1692_v0 = vmov 0.0   ;;  %vm1693_vm0 = vmmov 0   ;;  %v191_v1 = vld [vmem:[#allocation7 + $0x50] sm:$0xff]  ;;  %v190_v2 = vld [vmem:[#allocation7 + $0x48] sm:$0xff] }
  0x7c   :  { %261 = vmatprep.mubr.f32.mxu0 %v1692_v0  ;;  %1393 = vmatprep.subr.mxu1 %v1692_v0  ;;  %v188_v3 = vld [vmem:[#allocation7 + $0x38] sm:$0xff]  ;;  %v187_v4 = vld [vmem:[#allocation7 + $0x30] sm:$0xff]  ;;  %v185_v5 = vld [vmem:[#allocation7 + $0x20] sm:$0xff]  ;;  %vm193_vm1 = vcmask 261120   ;;  %s1694_s8 = smov [#allocation19]  }
  0x7d   :  { %1401 = vmatprep.mubr.msk.f32.mxu1 %vm1693_vm0, %v1692_v0  ;;  %221 = vmatprep.subr.mxu0 %v191_v1  ;;  %v168_v6 = vld [vmem:[#allocation2] sm:$0xff]  ;;  %v184_v7 = vld [vmem:[#allocation7 + $0x18] sm:$0xff]  ;;  %v182_v10 = vld [vmem:[#allocation7 + $0x8] sm:$0xff]  ;;  %s1269_s9 = sshll.u32 %s1694_s8, 4  ;;  %s1270_s9 = int_to_ptr.vmem [resolvable:$true] %s1269_s9 }
  0x7e   :  { %222 = vmatpush1.msra.mxu0 %v190_v2  ;;  %v1283_v8 = vld [vmem:[#allocation5] ss:$0 sm:$0xff]  ;;  %v1284_v9 = vld [vmem:[#allocation5 + $0x1] ss:$0 sm:$0xff]  ;;  %v189_v13 = vld [vmem:[#allocation7 + $0x40] sm:$0xff]  ;;  %s1640_s21 = scalar_lea.vmem %s1270_s9, 128  ;;  %p1645_p9 = scmp.lt.s32.totalorder %s1270_s9, %s1270_s9 }
  0x7f   :  { %223 = vmatprep.subr.mxu0 %v188_v3  ;;  %v174_v11 = vmul.f32 %v1283_v8, %v168_v6  ;;  %v192_v12 = vld [vmem:[#allocation7 + $0x58] sm:$0xff]  ;;  %v181_v14 = vld [vmem:[#allocation7] sm:$0xff]  ;;  %v186_v17 = vld [vmem:[#allocation7 + $0x28] sm:$0xff]  ;;  %p1641_p8 = scmp.ne.s32.totalorder %s1270_s9, %s1640_s21  ;;  %p1646_p10 = scmp.lt.s32.totalorder %s1640_s21, %s1640_s21 }
  0x80   :  { %224 = vmatpush1.msra.mxu0 %v187_v4  ;;  %1394 = vmatpush3.msra.mxu1 %v192_v12  ;;  %v342_v16 = vld [vmem:[#allocation8 + $0x18] sm:$0xff]  ;;  %v341_v18 = vld [vmem:[#allocation8 + $0x10] sm:$0xff]  ;;  %v340_v20 = vld [vmem:[#allocation8 + $0x8] sm:$0xff] }
  0x81   :  { %225 = vmatprep.subr.mxu0 %v185_v5  ;;  %v180_v15 = vadd.f32 %v1284_v9, %v174_v11  ;;  %1395 = vmatprep.subr.mxu1 %v1692_v0  ;;  %v183_v19 = vld [vmem:[#allocation7 + $0x10] sm:$0xff]  ;;  %v499_v21 = vld [vmem:[#allocation10 + $0xf8] sm:$0xff]  ;;  %v339_v22 = vld [vmem:[#allocation8] sm:$0xff]  ;;  %p1647_p11 = por %p1646_p10, %p1645_p9 }
  0x82   :  { %226 = vmatpush1.msra.mxu0 %v184_v7  ;;  %1396 = vmatpush3.msra.mxu1 %v189_v13  ;;  %v498_v24 = vld [vmem:[#allocation10 + $0xf0] sm:$0xff]  ;;  %v497_v25 = vld [vmem:[#allocation10 + $0xe8] sm:$0xff]  ;;  %v603_v26 = vld [vmem:[#allocation11 + $0xf8] sm:$0xff] }
  0x83   :  { %227 = vmatprep.subr.mxu0 %v182_v10  ;;  %1397 = vmatprep.subr.mxu1 %v1692_v0  ;;  %v338_v23 = vmul.f32 %v180_v15, %v180_v15  ;;  %v496_v27 = vld [vmem:[#allocation10 + $0xe0] sm:$0xff]  ;;  %v587_v28 = vld [vmem:[#allocation11 + $0x78] sm:$0xff]  ;;  %v602_v30 = vld [vmem:[#allocation11 + $0xf0] sm:$0xff]  ;;  %p1648_p12 = pnand %p1647_p11, %p1641_p8 }
  0x84   :  { %228 = vmatpush1.msra.mxu0 %v181_v14  ;;  %1398 = vmatpush3.msra.mxu1 %v186_v17  ;;  %v495_v29 = vld [vmem:[#allocation10 + $0xd8] sm:$0xff]  ;;  %v494_v31 = vld [vmem:[#allocation10 + $0xd0] sm:$0xff]  ;;  %v493_v33 = vld [vmem:[#allocation10 + $0xc8] sm:$0xff] }
  0x85   :  { %1285 = vmatmul.mubr.msk.f32.vlgmr.msra.gmra.mxu0 %vm193_vm1, %v180_v15  ;;  %1404 = vmatprep.subr.mxu0 %v1692_v0  ;;  %v586_v32 = vld [vmem:[#allocation11 + $0x70] sm:$0xff]  ;;  %v601_v34 = vld [vmem:[#allocation11 + $0xe8] sm:$0xff]  ;;  %v492_v35 = vld [vmem:[#allocation10 + $0xc0] sm:$0xff] }
  0x86   :  { %1405 = vmatpush3.msra.mxu0 %v342_v16  ;;  %1399 = vmatprep.subr.mxu1 %v1692_v0  ;;  %v585_v36 = vld [vmem:[#allocation11 + $0x68] sm:$0xff]  ;;  %v491_v37 = vld [vmem:[#allocation10 + $0xb8] sm:$0xff]  ;;  %v600_v38 = vld [vmem:[#allocation11 + $0xe0] sm:$0xff] }
  0x87   :  { %1406 = vmatprep.subr.mxu0 %v1692_v0  ;;  %1412 = vmatprep.mubr.msk.f32.mxu0 %vm1693_vm0, %v1692_v0  ;;  %v490_v39 = vld [vmem:[#allocation10 + $0xb0] sm:$0xff]  ;;  %v584_v40 = vld [vmem:[#allocation11 + $0x60] sm:$0xff]  ;;  %v489_v41 = vld [vmem:[#allocation10 + $0xa8] sm:$0xff] }
  0x88   :  { %1407 = vmatpush3.msra.mxu0 %v341_v18  ;;  %1400 = vmatpush3.msra.mxu1 %v183_v19  ;;  %v599_v42 = vld [vmem:[#allocation11 + $0xd8] sm:$0xff]  ;;  %v488_v43 = vld [vmem:[#allocation10 + $0xa0] sm:$0xff]  ;;  %v598_v46 = vld [vmem:[#allocation11 + $0xd0] sm:$0xff] }
  0x89   :  { %1408 = vmatprep.subr.mxu0 %v1692_v0  ;;  %1402 = vmatmul.mubr.msk.f32.vlgmr.msra.gmra.mxu1 %vm193_vm1, %v180_v15  ;;  %v583_v44 = vld [vmem:[#allocation11 + $0x58] sm:$0xff]  ;;  %v486_v47 = vld [vmem:[#allocation10 + $0x90] sm:$0xff]  ;;  %v485_v49 = vld [vmem:[#allocation10 + $0x88] sm:$0xff] }
  0x8a   :  { %1409 = vmatpush3.msra.mxu0 %v340_v20  ;;  %500 = vmatprep.subr.mxu1 %v499_v21  ;;  %v487_v45 = vld [vmem:[#allocation10 + $0x98] sm:$0xff]  ;;  %v582_v48 = vld [vmem:[#allocation11 + $0x50] sm:$0xff]  ;;  %v597_v50 = vld [vmem:[#allocation11 + $0xc8] sm:$0xff] }
  0x8b   :  { %1410 = vmatprep.subr.mxu0 %v1692_v0  ;;  %501 = vmatpush1.msra.mxu1 %v498_v24  ;;  %v484_v51 = vld [vmem:[#allocation10 + $0x80] sm:$0xff]  ;;  %v581_v52 = vld [vmem:[#allocation11 + $0x48] sm:$0xff]  ;;  %v483_v53 = vld [vmem:[#allocation10 + $0x78] sm:$0xff] }
  0x8c   :  { %1411 = vmatpush3.msra.mxu0 %v339_v22  ;;  %502 = vmatprep.subr.mxu1 %v497_v25  ;;  %v596_v54 = vld [vmem:[#allocation11 + $0xc0] sm:$0xff]  ;;  %v482_v55 = vld [vmem:[#allocation10 + $0x70] sm:$0xff]  ;;  %v481_v57 = vld [vmem:[#allocation10 + $0x68] sm:$0xff] }
  0x8d   :  { %1413 = vmatmul.mubr.msk.f32.vlgmr.msra.gmra.mxu0 %vm193_vm1, %v338_v23  ;;  %1323 = vmatprep.subr.mxu0 %v603_v26  ;;  %v580_v56 = vld [vmem:[#allocation11 + $0x40] sm:$0xff]  ;;  %v595_v58 = vld [vmem:[#allocation11 + $0xb8] sm:$0xff]  ;;  %v594_v62 = vld [vmem:[#allocation11 + $0xb0] sm:$0xff] }
  0x8e   :  { %503 = vmatpush1.msra.mxu1 %v496_v27  ;;  %1324 = vmatpush3.msra.mxu0 %v587_v28  ;;  %v480_v59 = vld [vmem:[#allocation10 + $0x60] sm:$0xff]  ;;  %v579_v60 = vld [vmem:[#allocation11 + $0x38] sm:$0xff]  ;;  %v478_v63 = vld [vmem:[#allocation10 + $0x50] sm:$0xff] }
  0x8f   :  { %504 = vmatprep.subr.mxu1 %v495_v29  ;;  %1325 = vmatprep.subr.mxu0 %v602_v30  ;;  %v479_v61 = vld [vmem:[#allocation10 + $0x58] sm:$0xff]  ;;  %v578_v1 = vld [vmem:[#allocation11 + $0x30] sm:$0xff]  ;;  %v477_v2 = vld [vmem:[#allocation10 + $0x48] sm:$0xff] }
  0x90   :  { %505 = vmatpush1.msra.mxu1 %v494_v31  ;;  %1326 = vmatpush3.msra.mxu0 %v586_v32  ;;  %v593_v3 = vld [vmem:[#allocation11 + $0xa8] sm:$0xff]  ;;  %v476_v4 = vld [vmem:[#allocation10 + $0x40] sm:$0xff]  ;;  %v475_v6 = vld [vmem:[#allocation10 + $0x38] sm:$0xff] }
  0x91   :  { %506 = vmatprep.subr.mxu1 %v493_v33  ;;  %1327 = vmatprep.subr.mxu0 %v601_v34  ;;  %v577_v5 = vld [vmem:[#allocation11 + $0x28] sm:$0xff]  ;;  %v592_v7 = vld [vmem:[#allocation11 + $0xa0] sm:$0xff]  ;;  %v474_v8 = vld [vmem:[#allocation10 + $0x30] sm:$0xff] }
  0x92   :  { %507 = vmatpush1.msra.mxu1 %v492_v35  ;;  %1328 = vmatpush3.msra.mxu0 %v585_v36  ;;  %v576_v9 = vld [vmem:[#allocation11 + $0x20] sm:$0xff]  ;;  %v473_v10 = vld [vmem:[#allocation10 + $0x28] sm:$0xff]  ;;  %v591_v11 = vld [vmem:[#allocation11 + $0x98] sm:$0xff] }
  0x93   :  { %508 = vmatprep.subr.mxu1 %v491_v37  ;;  %1329 = vmatprep.subr.mxu0 %v600_v38  ;;  %v472_v12 = vld [vmem:[#allocation10 + $0x20] sm:$0xff]  ;;  %v575_v13 = vld [vmem:[#allocation11 + $0x18] sm:$0xff]  ;;  %v590_v15 = vld [vmem:[#allocation11 + $0x90] sm:$0xff] }
  0x94   :  { %509 = vmatpush1.msra.mxu1 %v490_v39  ;;  %1330 = vmatpush3.msra.mxu0 %v584_v40  ;;  %v471_v14 = vld [vmem:[#allocation10 + $0x18] sm:$0xff]  ;;  %v470_v16 = vld [vmem:[#allocation10 + $0x10] sm:$0xff]  ;;  %v469_v18 = vld [vmem:[#allocation10 + $0x8] sm:$0xff] }
  0x95   :  { %510 = vmatprep.subr.mxu1 %v489_v41  ;;  %1331 = vmatprep.subr.mxu0 %v599_v42  ;;  %v574_v17 = vld [vmem:[#allocation11 + $0x10] sm:$0xff]  ;;  %v589_v19 = vld [vmem:[#allocation11 + $0x88] sm:$0xff]  ;;  %v468_v20 = vld [vmem:[#allocation10] sm:$0xff] }
  0x96   :  { %511 = vmatpush1.msra.mxu1 %v488_v43  ;;  %1332 = vmatpush3.msra.mxu0 %v583_v44  ;;  %v573_v21 = vld [vmem:[#allocation11 + $0x8] sm:$0xff]  ;;  %v588_v22 = vld [vmem:[#allocation11 + $0x80] sm:$0xff]  ;;  %v771_v25 = vld [vmem:[#allocation13 + $0x1f8] sm:$0xff] }
  0x97   :  { %512 = vmatprep.subr.mxu1 %v487_v45  ;;  %1333 = vmatprep.subr.mxu0 %v598_v46  ;;  %v572_v23 = vld [vmem:[#allocation11] sm:$0xff]  ;;  %v769_v24 = vld [vmem:[#allocation13 + $0x1e8] sm:$0xff] }
  0x98   :  { %564 = vmatprep.mubr.f32.mxu1 %v1692_v0  ;;  %513 = vmatpush1.msra.mxu1 %v486_v47  ;;  %v1288_v27 = vld [vmem:[#allocation17] ss:$0 sm:$0xff]  ;;  %v1289_v28 = vld [vmem:[#allocation17 + $0x1] ss:$0 sm:$0xff]  ;;  %v1290_v32 = vld [vmem:[#allocation17 + $0x2] ss:$0 sm:$0xff] }
  0x99   :  { %1334 = vmatpush3.msra.mxu0 %v582_v48  ;;  %514 = vmatprep.subr.mxu1 %v485_v49  ;;  %v1294_v36 = vld [vmem:[#allocation17 + $0x6] ss:$0 sm:$0xff]  ;;  %v1291_v39 = vld [vmem:[#allocation17 + $0x3] ss:$0 sm:$0xff]  ;;  %v1295_v42 = vld [vmem:[#allocation17 + $0x7] ss:$0 sm:$0xff] }
  0x9a   :  { %1335 = vmatprep.subr.mxu0 %v597_v50  ;;  %515 = vmatpush1.msra.mxu1 %v484_v51  ;;  %v1292_v46 = vld [vmem:[#allocation17 + $0x4] ss:$0 sm:$0xff]  ;;  %v1293_v49 = vld [vmem:[#allocation17 + $0x5] ss:$0 sm:$0xff] }
  0x9b   :  { %1336 = vmatpush3.msra.mxu0 %v581_v52  ;;  %516 = vmatprep.subr.mxu1 %v483_v53  ;;  %v768_v52 = vld [vmem:[#allocation13 + $0x1e0] sm:$0xff]  ;;  %v765_v53 = vld [vmem:[#allocation13 + $0x1c8] sm:$0xff] }
  0x9c   :  { %1337 = vmatprep.subr.mxu0 %v596_v54  ;;  %517 = vmatpush1.msra.mxu1 %v482_v55  ;;  %v770_v55 = vld [vmem:[#allocation13 + $0x1f0] sm:$0xff] }
  0x9d   :  { %1338 = vmatpush3.msra.mxu0 %v580_v56  ;;  %518 = vmatprep.subr.mxu1 %v481_v57  ;;  %v764_v56 = vld [vmem:[#allocation13 + $0x1c0] sm:$0xff]  ;;  %v767_v57 = vld [vmem:[#allocation13 + $0x1d8] sm:$0xff] }
  0x9e   :  { %1339 = vmatprep.subr.mxu0 %v595_v58  ;;  %519 = vmatpush1.msra.mxu1 %v480_v59  ;;  %v761_v58 = vld [vmem:[#allocation13 + $0x1a8] sm:$0xff]  ;;  %v766_v59 = vld [vmem:[#allocation13 + $0x1d0] sm:$0xff] }
  0x9f   :  { %1340 = vmatpush3.msra.mxu0 %v579_v60  ;;  %520 = vmatprep.subr.mxu1 %v479_v61  ;;  %v760_v60 = vld [vmem:[#allocation13 + $0x1a0] sm:$0xff]  ;;  %v763_v61 = vld [vmem:[#allocation13 + $0x1b8] sm:$0xff] }
  0xa0   :  { %1341 = vmatprep.subr.mxu0 %v594_v62  ;;  %521 = vmatpush1.msra.mxu1 %v478_v63  ;;  %v757_v62 = vld [vmem:[#allocation13 + $0x188] sm:$0xff]  ;;  %v762_v63 = vld [vmem:[#allocation13 + $0x1b0] sm:$0xff] }
  0xa1   :  { %1342 = vmatpush3.msra.mxu0 %v578_v1  ;;  %522 = vmatprep.subr.mxu1 %v477_v2  ;;  %v756_v1 = vld [vmem:[#allocation13 + $0x180] sm:$0xff]  ;;  %v759_v2 = vld [vmem:[#allocation13 + $0x198] sm:$0xff] }
  0xa2   :  { %1343 = vmatprep.subr.mxu0 %v593_v3  ;;  %523 = vmatpush1.msra.mxu1 %v476_v4  ;;  %v753_v3 = vld [vmem:[#allocation13 + $0x168] sm:$0xff]  ;;  %v758_v4 = vld [vmem:[#allocation13 + $0x190] sm:$0xff] }
  0xa3   :  { %1344 = vmatpush3.msra.mxu0 %v577_v5  ;;  %524 = vmatprep.subr.mxu1 %v475_v6  ;;  %v752_v5 = vld [vmem:[#allocation13 + $0x160] sm:$0xff]  ;;  %v755_v6 = vld [vmem:[#allocation13 + $0x178] sm:$0xff] }
  0xa4   :  { %1345 = vmatprep.subr.mxu0 %v592_v7  ;;  %525 = vmatpush1.msra.mxu1 %v474_v8  ;;  %v749_v7 = vld [vmem:[#allocation13 + $0x148] sm:$0xff]  ;;  %v754_v8 = vld [vmem:[#allocation13 + $0x170] sm:$0xff] }
  0xa5   :  { %1346 = vmatpush3.msra.mxu0 %v576_v9  ;;  %526 = vmatprep.subr.mxu1 %v473_v10  ;;  %v748_v9 = vld [vmem:[#allocation13 + $0x140] sm:$0xff]  ;;  %v751_v10 = vld [vmem:[#allocation13 + $0x158] sm:$0xff] }
  0xa6   :  { %1347 = vmatprep.subr.mxu0 %v591_v11  ;;  %527 = vmatpush1.msra.mxu1 %v472_v12  ;;  %v745_v11 = vld [vmem:[#allocation13 + $0x128] sm:$0xff]  ;;  %v750_v12 = vld [vmem:[#allocation13 + $0x150] sm:$0xff] }
  0xa7   :  { %1348 = vmatpush3.msra.mxu0 %v575_v13  ;;  %528 = vmatprep.subr.mxu1 %v471_v14  ;;  %v744_v13 = vld [vmem:[#allocation13 + $0x120] sm:$0xff]  ;;  %v747_v14 = vld [vmem:[#allocation13 + $0x138] sm:$0xff] }
  0xa8   :  { %1349 = vmatprep.subr.mxu0 %v590_v15  ;;  %529 = vmatpush1.msra.mxu1 %v470_v16  ;;  %v741_v15 = vld [vmem:[#allocation13 + $0x108] sm:$0xff]  ;;  %v746_v16 = vld [vmem:[#allocation13 + $0x130] sm:$0xff] }
  0xa9   :  { %1350 = vmatpush3.msra.mxu0 %v574_v17  ;;  %530 = vmatprep.subr.mxu1 %v469_v18  ;;  %v740_v17 = vld [vmem:[#allocation13 + $0x100] sm:$0xff]  ;;  %v743_v18 = vld [vmem:[#allocation13 + $0x118] sm:$0xff] }
  0xaa   :  { %1351 = vmatprep.subr.mxu0 %v589_v19  ;;  %531 = vmatpush1.msra.mxu1 %v468_v20  ;;  %v737_v19 = vld [vmem:[#allocation13 + $0xe8] sm:$0xff]  ;;  %v742_v20 = vld [vmem:[#allocation13 + $0x110] sm:$0xff] }
  0xab   :  { %1352 = vmatpush3.msra.mxu0 %v573_v21  ;;  %836 = vmatprep.subr.mxu1 %v769_v24  ;;  %v736_v21 = vld [vmem:[#allocation13 + $0xe0] sm:$0xff]  ;;  %v738_v24 = vld [vmem:[#allocation13 + $0xf0] sm:$0xff] }
  0xac   :  { %1353 = vmatprep.subr.mxu0 %v588_v22  ;;  %v739_v22 = vld [vmem:[#allocation13 + $0xf8] sm:$0xff] }
  0xad   :  { %1354 = vmatpush3.msra.mxu0 %v572_v23  ;;  %v733_v23 = vld [vmem:[#allocation13 + $0xc8] sm:$0xff] }
  0xae   :  { %907 = vmatprep.subr.mxu0 %v771_v25  ;;  %v732_v25 = vld [vmem:[#allocation13 + $0xc0] sm:$0xff] }
 0x145   :  { %v263_v26 = vpop.f32.mrf.mxu0 }
 0x146   :  { %v421_v30 = vadd.f32 %v1288_v27, %v263_v26  ;;  %v735_v26 = vld [vmem:[#allocation13 + $0xd8] sm:$0xff]  ;;  %v729_v27 = vld [vmem:[#allocation13 + $0xa8] sm:$0xff] }
 0x147   :  { %v265_v29 = vpop.f32.mrf.mxu0 }
 0x148   :  { %v427_v31 = vadd.f32 %v1289_v28, %v265_v29  ;;  %v734_v28 = vld [vmem:[#allocation13 + $0xd0] sm:$0xff]  ;;  %v728_v29 = vld [vmem:[#allocation13 + $0xa0] sm:$0xff] }
 0x149   :  { %v334_v33 = vpop.f32.mrf.mxu1 }
 0x14a   :  { %v433_v34 = vadd.f32 %v1290_v32, %v334_v33  ;;  %v434_v35 = vmul.f32 %v427_v31, %v421_v30  ;;  %v731_v30 = vld [vmem:[#allocation13 + $0xb8] sm:$0xff]  ;;  %v725_v31 = vld [vmem:[#allocation13 + $0x88] sm:$0xff]  ;;  %v730_v32 = vld [vmem:[#allocation13 + $0xb0] sm:$0xff] }
 0x14b   :  { %v1403_v37 = vpop.f32.mrf.mxu1  ;;  %v724_v33 = vld [vmem:[#allocation13 + $0x80] sm:$0xff] }
 0x14c   :  { %v443_v40 = vmax.f32 %v433_v34, 0.0  ;;  %v727_v34 = vld [vmem:[#allocation13 + $0x98] sm:$0xff]  ;;  %v720_v37 = vld [vmem:[#allocation13 + $0x60] sm:$0xff] }
 0x14d   :  { %v412_v38 = vpop.f32.mrf.mxu0 }
 0x14e   :  { %v435_v41 = vadd.f32 %v434_v35, %v412_v38  ;;  %v461_v43 = vmul.f32 %v1294_v36, %v443_v40  ;;  %v721_v35 = vld [vmem:[#allocation13 + $0x68] sm:$0xff]  ;;  %v726_v36 = vld [vmem:[#allocation13 + $0x90] sm:$0xff]  ;;  %v723_v38 = vld [vmem:[#allocation13 + $0x78] sm:$0xff] }
 0x14f   :  { %v1414_v44 = vpop.f32.mrf.mxu0  ;;  %v722_v40 = vld [vmem:[#allocation13 + $0x70] sm:$0xff] }
 0x150   :  { %v441_v45 = vadd.f32 %v1291_v39, %v435_v41  ;;  %v467_v47 = vadd.f32 %v1295_v42, %v461_v43  ;;  %v717_v39 = vld [vmem:[#allocation13 + $0x48] sm:$0xff]  ;;  %v716_v41 = vld [vmem:[#allocation13 + $0x40] sm:$0xff]  ;;  %v719_v42 = vld [vmem:[#allocation13 + $0x58] sm:$0xff] }
 0x151   :  { %v713_v43 = vld [vmem:[#allocation13 + $0x28] sm:$0xff]  ;;  %v718_v44 = vld [vmem:[#allocation13 + $0x50] sm:$0xff] }
 0x152   :  { %v442_v48 = vmax.f32 %v441_v45, 0.0  ;;  %668 = vmatprep.mubr.f32.mxu0 %v467_v47  ;;  %v712_v45 = vld [vmem:[#allocation13 + $0x20] sm:$0xff]  ;;  %v709_v47 = vld [vmem:[#allocation13 + $0x8] sm:$0xff] }
 0x154   :  { %v449_v50 = vmul.f32 %v1292_v46, %v442_v48  ;;  %v715_v46 = vld [vmem:[#allocation13 + $0x38] sm:$0xff]  ;;  %v714_v48 = vld [vmem:[#allocation13 + $0x30] sm:$0xff] }
 0x156   :  { %v455_v51 = vadd.f32 %v1293_v49, %v449_v50  ;;  %v708_v49 = vld [vmem:[#allocation13] sm:$0xff]  ;;  %v711_v50 = vld [vmem:[#allocation13 + $0x18] sm:$0xff] }
 0x158   :  { %565 = vmatmul.mubr.f32.vlgmr.msra.gmra.mxu1 %v455_v51  ;;  %v571_v54 = vmul.f32 %v455_v51, %v455_v51  ;;  %v833_v51 = vld [vmem:[#allocation13 + $0x3e8] sm:$0xff] }
 0x159   :  { %837 = vmatpush1.msra.mxu1 %v768_v52  ;;  %v710_v52 = vld [vmem:[#allocation13 + $0x10] sm:$0xff] }
 0x15a   :  { %669 = vmatmul.mubr.f32.vlgmr.msra.gmra.mxu0 %v571_v54  ;;  %838 = vmatprep.subr.mxu1 %v765_v53  ;;  %v832_v53 = vld [vmem:[#allocation13 + $0x3e0] sm:$0xff]  ;;  %v835_v54 = vld [vmem:[#allocation13 + $0x3f8] sm:$0xff] }
 0x15b   :  { %908 = vmatpush1.msra.mxu0 %v770_v55  ;;  %839 = vmatpush1.msra.mxu1 %v764_v56  ;;  %v829_v55 = vld [vmem:[#allocation13 + $0x3c8] sm:$0xff]  ;;  %v834_v56 = vld [vmem:[#allocation13 + $0x3f0] sm:$0xff] }
 0x15c   :  { %909 = vmatprep.subr.mxu0 %v767_v57  ;;  %840 = vmatprep.subr.mxu1 %v761_v58  ;;  %v828_v57 = vld [vmem:[#allocation13 + $0x3c0] sm:$0xff]  ;;  %v831_v58 = vld [vmem:[#allocation13 + $0x3d8] sm:$0xff] }
 0x15d   :  { %910 = vmatpush1.msra.mxu0 %v766_v59  ;;  %841 = vmatpush1.msra.mxu1 %v760_v60  ;;  %v825_v59 = vld [vmem:[#allocation13 + $0x3a8] sm:$0xff]  ;;  %v830_v60 = vld [vmem:[#allocation13 + $0x3d0] sm:$0xff] }
 0x15e   :  { %911 = vmatprep.subr.mxu0 %v763_v61  ;;  %842 = vmatprep.subr.mxu1 %v757_v62  ;;  %v824_v61 = vld [vmem:[#allocation13 + $0x3a0] sm:$0xff]  ;;  %v827_v62 = vld [vmem:[#allocation13 + $0x3b8] sm:$0xff] }
 0x15f   :  { %912 = vmatpush1.msra.mxu0 %v762_v63  ;;  %843 = vmatpush1.msra.mxu1 %v756_v1  ;;  %v821_v63 = vld [vmem:[#allocation13 + $0x388] sm:$0xff]  ;;  %v826_v1 = vld [vmem:[#allocation13 + $0x3b0] sm:$0xff] }
 0x160   :  { %913 = vmatprep.subr.mxu0 %v759_v2  ;;  %844 = vmatprep.subr.mxu1 %v753_v3  ;;  %v820_v2 = vld [vmem:[#allocation13 + $0x380] sm:$0xff]  ;;  %v823_v3 = vld [vmem:[#allocation13 + $0x398] sm:$0xff] }
 0x161   :  { %914 = vmatpush1.msra.mxu0 %v758_v4  ;;  %845 = vmatpush1.msra.mxu1 %v752_v5  ;;  %v817_v4 = vld [vmem:[#allocation13 + $0x368] sm:$0xff]  ;;  %v822_v5 = vld [vmem:[#allocation13 + $0x390] sm:$0xff] }
 0x162   :  { %915 = vmatprep.subr.mxu0 %v755_v6  ;;  %846 = vmatprep.subr.mxu1 %v749_v7  ;;  %v816_v6 = vld [vmem:[#allocation13 + $0x360] sm:$0xff]  ;;  %v819_v7 = vld [vmem:[#allocation13 + $0x378] sm:$0xff] }
 0x163   :  { %916 = vmatpush1.msra.mxu0 %v754_v8  ;;  %847 = vmatpush1.msra.mxu1 %v748_v9  ;;  %v813_v8 = vld [vmem:[#allocation13 + $0x348] sm:$0xff]  ;;  %v818_v9 = vld [vmem:[#allocation13 + $0x370] sm:$0xff] }
 0x164   :  { %917 = vmatprep.subr.mxu0 %v751_v10  ;;  %848 = vmatprep.subr.mxu1 %v745_v11  ;;  %v812_v10 = vld [vmem:[#allocation13 + $0x340] sm:$0xff]  ;;  %v815_v11 = vld [vmem:[#allocation13 + $0x358] sm:$0xff] }
 0x165   :  { %918 = vmatpush1.msra.mxu0 %v750_v12  ;;  %849 = vmatpush1.msra.mxu1 %v744_v13  ;;  %v814_v12 = vld [vmem:[#allocation13 + $0x350] sm:$0xff]  ;;  %v809_v13 = vld [vmem:[#allocation13 + $0x328] sm:$0xff] }
 0x166   :  { %919 = vmatprep.subr.mxu0 %v747_v14  ;;  %850 = vmatprep.subr.mxu1 %v741_v15  ;;  %v811_v14 = vld [vmem:[#allocation13 + $0x338] sm:$0xff]  ;;  %v808_v15 = vld [vmem:[#allocation13 + $0x320] sm:$0xff] }
 0x167   :  { %920 = vmatpush1.msra.mxu0 %v746_v16  ;;  %851 = vmatpush1.msra.mxu1 %v740_v17  ;;  %v810_v16 = vld [vmem:[#allocation13 + $0x330] sm:$0xff]  ;;  %v805_v17 = vld [vmem:[#allocation13 + $0x308] sm:$0xff] }
 0x168   :  { %921 = vmatprep.subr.mxu0 %v743_v18  ;;  %852 = vmatprep.subr.mxu1 %v737_v19  ;;  %v807_v18 = vld [vmem:[#allocation13 + $0x318] sm:$0xff]  ;;  %v804_v19 = vld [vmem:[#allocation13 + $0x300] sm:$0xff] }
 0x169   :  { %922 = vmatpush1.msra.mxu0 %v742_v20  ;;  %853 = vmatpush1.msra.mxu1 %v736_v21  ;;  %v806_v20 = vld [vmem:[#allocation13 + $0x310] sm:$0xff]  ;;  %v801_v21 = vld [vmem:[#allocation13 + $0x2e8] sm:$0xff] }
 0x16a   :  { %923 = vmatprep.subr.mxu0 %v739_v22  ;;  %854 = vmatprep.subr.mxu1 %v733_v23  ;;  %v803_v22 = vld [vmem:[#allocation13 + $0x2f8] sm:$0xff]  ;;  %v800_v23 = vld [vmem:[#allocation13 + $0x2e0] sm:$0xff] }
 0x16b   :  { %924 = vmatpush1.msra.mxu0 %v738_v24  ;;  %855 = vmatpush1.msra.mxu1 %v732_v25  ;;  %v802_v24 = vld [vmem:[#allocation13 + $0x2f0] sm:$0xff]  ;;  %v797_v25 = vld [vmem:[#allocation13 + $0x2c8] sm:$0xff] }
 0x16c   :  { %925 = vmatprep.subr.mxu0 %v735_v26  ;;  %856 = vmatprep.subr.mxu1 %v729_v27  ;;  %v799_v26 = vld [vmem:[#allocation13 + $0x2d8] sm:$0xff]  ;;  %v796_v27 = vld [vmem:[#allocation13 + $0x2c0] sm:$0xff] }
 0x16d   :  { %926 = vmatpush1.msra.mxu0 %v734_v28  ;;  %857 = vmatpush1.msra.mxu1 %v728_v29  ;;  %v798_v28 = vld [vmem:[#allocation13 + $0x2d0] sm:$0xff]  ;;  %v793_v29 = vld [vmem:[#allocation13 + $0x2a8] sm:$0xff] }
 0x16e   :  { %927 = vmatprep.subr.mxu0 %v731_v30  ;;  %858 = vmatprep.subr.mxu1 %v725_v31  ;;  %v795_v30 = vld [vmem:[#allocation13 + $0x2b8] sm:$0xff]  ;;  %v792_v31 = vld [vmem:[#allocation13 + $0x2a0] sm:$0xff] }
 0x16f   :  { %928 = vmatpush1.msra.mxu0 %v730_v32  ;;  %859 = vmatpush1.msra.mxu1 %v724_v33  ;;  %v794_v32 = vld [vmem:[#allocation13 + $0x2b0] sm:$0xff]  ;;  %v789_v33 = vld [vmem:[#allocation13 + $0x288] sm:$0xff] }
 0x170   :  { %929 = vmatprep.subr.mxu0 %v727_v34  ;;  %860 = vmatprep.subr.mxu1 %v721_v35  ;;  %v791_v34 = vld [vmem:[#allocation13 + $0x298] sm:$0xff]  ;;  %v788_v35 = vld [vmem:[#allocation13 + $0x280] sm:$0xff] }
 0x171   :  { %930 = vmatpush1.msra.mxu0 %v726_v36  ;;  %861 = vmatpush1.msra.mxu1 %v720_v37  ;;  %v790_v36 = vld [vmem:[#allocation13 + $0x290] sm:$0xff]  ;;  %v785_v37 = vld [vmem:[#allocation13 + $0x268] sm:$0xff] }
 0x172   :  { %931 = vmatprep.subr.mxu0 %v723_v38  ;;  %862 = vmatprep.subr.mxu1 %v717_v39  ;;  %v787_v38 = vld [vmem:[#allocation13 + $0x278] sm:$0xff]  ;;  %v784_v39 = vld [vmem:[#allocation13 + $0x260] sm:$0xff] }
 0x173   :  { %932 = vmatpush1.msra.mxu0 %v722_v40  ;;  %863 = vmatpush1.msra.mxu1 %v716_v41  ;;  %v786_v40 = vld [vmem:[#allocation13 + $0x270] sm:$0xff]  ;;  %v781_v41 = vld [vmem:[#allocation13 + $0x248] sm:$0xff] }
 0x174   :  { %933 = vmatprep.subr.mxu0 %v719_v42  ;;  %864 = vmatprep.subr.mxu1 %v713_v43  ;;  %v783_v42 = vld [vmem:[#allocation13 + $0x258] sm:$0xff]  ;;  %v780_v43 = vld [vmem:[#allocation13 + $0x240] sm:$0xff] }
 0x175   :  { %934 = vmatpush1.msra.mxu0 %v718_v44  ;;  %865 = vmatpush1.msra.mxu1 %v712_v45  ;;  %v782_v44 = vld [vmem:[#allocation13 + $0x250] sm:$0xff]  ;;  %v777_v45 = vld [vmem:[#allocation13 + $0x228] sm:$0xff] }
 0x176   :  { %935 = vmatprep.subr.mxu0 %v715_v46  ;;  %866 = vmatprep.subr.mxu1 %v709_v47  ;;  %v779_v46 = vld [vmem:[#allocation13 + $0x238] sm:$0xff]  ;;  %v776_v47 = vld [vmem:[#allocation13 + $0x220] sm:$0xff] }
 0x177   :  { %936 = vmatpush1.msra.mxu0 %v714_v48  ;;  %867 = vmatpush1.msra.mxu1 %v708_v49  ;;  %v778_v48 = vld [vmem:[#allocation13 + $0x230] sm:$0xff]  ;;  %v773_v49 = vld [vmem:[#allocation13 + $0x208] sm:$0xff] }
 0x178   :  { %937 = vmatprep.subr.mxu0 %v711_v50  ;;  %868 = vmatprep.subr.mxu1 %v833_v51  ;;  %v775_v50 = vld [vmem:[#allocation13 + $0x218] sm:$0xff]  ;;  %v772_v51 = vld [vmem:[#allocation13 + $0x200] sm:$0xff] }
 0x179   :  { %938 = vmatpush1.msra.mxu0 %v710_v52  ;;  %869 = vmatpush2.msra.mxu1 %v832_v53  ;;  %v774_v52 = vld [vmem:[#allocation13 + $0x210] sm:$0xff]  ;;  %v1061_v53 = vld [vmem:[#allocation14 + $0xf8] sm:$0xff] }
 0x17a   :  { %939 = vmatprep.subr.mxu0 %v835_v54  ;;  %870 = vmatprep.subr.mxu1 %v829_v55  ;;  %v1165_v54 = vld [vmem:[#allocation16 + $0xf8] sm:$0xff] }
 0x17b   :  { %940 = vmatpush2.msra.mxu0 %v834_v56  ;;  %871 = vmatpush2.msra.mxu1 %v828_v57  ;;  %v1296_v56 = vld [vmem:[#allocation17 + $0x8] ss:$0 sm:$0xff]  ;;  %v1297_v57 = vld [vmem:[#allocation17 + $0x9] ss:$0 sm:$0xff] }
 0x17c   :  { %941 = vmatprep.subr.mxu0 %v831_v58  ;;  %872 = vmatprep.subr.mxu1 %v825_v59 }
 0x17d   :  { %942 = vmatpush2.msra.mxu0 %v830_v60  ;;  %873 = vmatpush2.msra.mxu1 %v824_v61 }
 0x17e   :  { %943 = vmatprep.subr.mxu0 %v827_v62  ;;  %874 = vmatprep.subr.mxu1 %v821_v63 }
 0x17f   :  { %944 = vmatpush2.msra.mxu0 %v826_v1  ;;  %875 = vmatpush2.msra.mxu1 %v820_v2  ;;  %v1298_v2 = vld [vmem:[#allocation17 + $0xa] ss:$0 sm:$0xff] }
 0x180   :  { %945 = vmatprep.subr.mxu0 %v823_v3  ;;  %876 = vmatprep.subr.mxu1 %v817_v4 }
 0x181   :  { %946 = vmatpush2.msra.mxu0 %v822_v5  ;;  %877 = vmatpush2.msra.mxu1 %v816_v6  ;;  %v1299_v5 = vld [vmem:[#allocation17 + $0xb] ss:$0 sm:$0xff] }
 0x182   :  { %947 = vmatprep.subr.mxu0 %v819_v7  ;;  %878 = vmatprep.subr.mxu1 %v813_v8  ;;  %v1300_v7 = vld [vmem:[#allocation17 + $0xc] ss:$0 sm:$0xff] }
 0x183   :  { %948 = vmatpush2.msra.mxu0 %v818_v9  ;;  %879 = vmatpush2.msra.mxu1 %v812_v10 }
 0x184   :  { %949 = vmatprep.subr.mxu0 %v815_v11  ;;  %880 = vmatprep.subr.mxu1 %v809_v13  ;;  %v1060_v11 = vld [vmem:[#allocation14 + $0xf0] sm:$0xff]  ;;  %v1059_v13 = vld [vmem:[#allocation14 + $0xe8] sm:$0xff] }
 0x185   :  { %950 = vmatpush2.msra.mxu0 %v814_v12  ;;  %881 = vmatpush2.msra.mxu1 %v808_v15  ;;  %v1149_v12 = vld [vmem:[#allocation16 + $0x78] sm:$0xff]  ;;  %v1058_v15 = vld [vmem:[#allocation14 + $0xe0] sm:$0xff] }
 0x186   :  { %951 = vmatprep.subr.mxu0 %v811_v14  ;;  %882 = vmatprep.subr.mxu1 %v805_v17  ;;  %v1164_v14 = vld [vmem:[#allocation16 + $0xf0] sm:$0xff]  ;;  %v1057_v17 = vld [vmem:[#allocation14 + $0xd8] sm:$0xff] }
 0x187   :  { %952 = vmatpush2.msra.mxu0 %v810_v16  ;;  %883 = vmatpush2.msra.mxu1 %v804_v19  ;;  %v1148_v16 = vld [vmem:[#allocation16 + $0x70] sm:$0xff] }
 0x188   :  { %953 = vmatprep.subr.mxu0 %v807_v18  ;;  %884 = vmatprep.subr.mxu1 %v801_v21  ;;  %v1163_v18 = vld [vmem:[#allocation16 + $0xe8] sm:$0xff]  ;;  %v1056_v19 = vld [vmem:[#allocation14 + $0xd0] sm:$0xff] }
 0x189   :  { %954 = vmatpush2.msra.mxu0 %v806_v20  ;;  %885 = vmatpush2.msra.mxu1 %v800_v23  ;;  %v1147_v20 = vld [vmem:[#allocation16 + $0x68] sm:$0xff]  ;;  %v1054_v23 = vld [vmem:[#allocation14 + $0xc0] sm:$0xff] }
 0x18a   :  { %955 = vmatprep.subr.mxu0 %v803_v22  ;;  %886 = vmatprep.subr.mxu1 %v797_v25  ;;  %v1055_v21 = vld [vmem:[#allocation14 + $0xc8] sm:$0xff]  ;;  %v1162_v22 = vld [vmem:[#allocation16 + $0xe0] sm:$0xff]  ;;  %v1053_v25 = vld [vmem:[#allocation14 + $0xb8] sm:$0xff] }
 0x18b   :  { %956 = vmatpush2.msra.mxu0 %v802_v24  ;;  %887 = vmatpush2.msra.mxu1 %v796_v27  ;;  %v1146_v24 = vld [vmem:[#allocation16 + $0x60] sm:$0xff]  ;;  %v1052_v27 = vld [vmem:[#allocation14 + $0xb0] sm:$0xff] }
 0x18c   :  { %957 = vmatprep.subr.mxu0 %v799_v26  ;;  %888 = vmatprep.subr.mxu1 %v793_v29  ;;  %v1161_v26 = vld [vmem:[#allocation16 + $0xd8] sm:$0xff]  ;;  %v1051_v29 = vld [vmem:[#allocation14 + $0xa8] sm:$0xff] }
 0x18d   :  { %958 = vmatpush2.msra.mxu0 %v798_v28  ;;  %889 = vmatpush2.msra.mxu1 %v792_v31  ;;  %v1145_v28 = vld [vmem:[#allocation16 + $0x58] sm:$0xff]  ;;  %v1050_v31 = vld [vmem:[#allocation14 + $0xa0] sm:$0xff] }
 0x18e   :  { %959 = vmatprep.subr.mxu0 %v795_v30  ;;  %890 = vmatprep.subr.mxu1 %v789_v33  ;;  %v1160_v30 = vld [vmem:[#allocation16 + $0xd0] sm:$0xff]  ;;  %v1049_v33 = vld [vmem:[#allocation14 + $0x98] sm:$0xff] }
 0x18f   :  { %960 = vmatpush2.msra.mxu0 %v794_v32  ;;  %891 = vmatpush2.msra.mxu1 %v788_v35  ;;  %v1144_v32 = vld [vmem:[#allocation16 + $0x50] sm:$0xff] }
 0x190   :  { %961 = vmatprep.subr.mxu0 %v791_v34  ;;  %892 = vmatprep.subr.mxu1 %v785_v37  ;;  %v1159_v34 = vld [vmem:[#allocation16 + $0xc8] sm:$0xff]  ;;  %v1048_v35 = vld [vmem:[#allocation14 + $0x90] sm:$0xff]  ;;  %v1046_v37 = vld [vmem:[#allocation14 + $0x80] sm:$0xff] }
 0x191   :  { %962 = vmatpush2.msra.mxu0 %v790_v36  ;;  %893 = vmatpush2.msra.mxu1 %v784_v39  ;;  %v1047_v36 = vld [vmem:[#allocation14 + $0x88] sm:$0xff]  ;;  %v1045_v39 = vld [vmem:[#allocation14 + $0x78] sm:$0xff] }
 0x192   :  { %963 = vmatprep.subr.mxu0 %v787_v38  ;;  %894 = vmatprep.subr.mxu1 %v781_v41  ;;  %v1143_v38 = vld [vmem:[#allocation16 + $0x48] sm:$0xff]  ;;  %v1044_v41 = vld [vmem:[#allocation14 + $0x70] sm:$0xff] }
 0x193   :  { %964 = vmatpush2.msra.mxu0 %v786_v40  ;;  %895 = vmatpush2.msra.mxu1 %v780_v43  ;;  %v1158_v40 = vld [vmem:[#allocation16 + $0xc0] sm:$0xff]  ;;  %v1043_v43 = vld [vmem:[#allocation14 + $0x68] sm:$0xff] }
 0x194   :  { %965 = vmatprep.subr.mxu0 %v783_v42  ;;  %896 = vmatprep.subr.mxu1 %v777_v45  ;;  %v1142_v42 = vld [vmem:[#allocation16 + $0x40] sm:$0xff] }
 0x195   :  { %966 = vmatpush2.msra.mxu0 %v782_v44  ;;  %897 = vmatpush2.msra.mxu1 %v776_v47  ;;  %v1157_v44 = vld [vmem:[#allocation16 + $0xb8] sm:$0xff]  ;;  %v1042_v45 = vld [vmem:[#allocation14 + $0x60] sm:$0xff]  ;;  %v1156_v47 = vld [vmem:[#allocation16 + $0xb0] sm:$0xff] }
 0x196   :  { %967 = vmatprep.subr.mxu0 %v779_v46  ;;  %898 = vmatprep.subr.mxu1 %v773_v49  ;;  %v1141_v46 = vld [vmem:[#allocation16 + $0x38] sm:$0xff]  ;;  %v1140_v49 = vld [vmem:[#allocation16 + $0x30] sm:$0xff] }
 0x197   :  { %968 = vmatpush2.msra.mxu0 %v778_v48  ;;  %899 = vmatpush2.msra.mxu1 %v772_v51  ;;  %v1040_v48 = vld [vmem:[#allocation14 + $0x50] sm:$0xff]  ;;  %v1155_v51 = vld [vmem:[#allocation16 + $0xa8] sm:$0xff] }
 0x198   :  { %969 = vmatprep.subr.mxu0 %v775_v50  ;;  %1062 = vmatprep.subr.mxu1 %v1061_v53  ;;  %v1039_v50 = vld [vmem:[#allocation14 + $0x48] sm:$0xff] }
 0x199   :  { %970 = vmatpush2.msra.mxu0 %v774_v52  ;;  %v1038_v52 = vld [vmem:[#allocation14 + $0x40] sm:$0xff]  ;;  %v1139_v53 = vld [vmem:[#allocation16 + $0x28] sm:$0xff] }
 0x19a   :  { %1358 = vmatprep.subr.mxu0 %v1165_v54  ;;  %v1037_v54 = vld [vmem:[#allocation14 + $0x38] sm:$0xff] }
 0x218   :  { %v566_v55 = vpop.f32.mrf.mxu1 }
 0x219   :  { %v679_v60 = vadd.f32 %v1296_v56, %v566_v55  ;;  %v1154_v55 = vld [vmem:[#allocation16 + $0xa0] sm:$0xff]  ;;  %v1036_v56 = vld [vmem:[#allocation14 + $0x30] sm:$0xff] }
 0x21a   :  { %v568_v58 = vpop.f32.mrf.mxu1  ;;  %v1355_v59 = vpop.f32.mrf.mxu0 }
 0x21b   :  { %v685_v61 = vadd.f32 %v1297_v57, %v568_v58  ;;  %v1138_v57 = vld [vmem:[#allocation16 + $0x20] sm:$0xff]  ;;  %v1035_v58 = vld [vmem:[#allocation14 + $0x28] sm:$0xff] }
 0x21c   :  { %v1356_v62 = vpop.f32.mrf.mxu0 }
 0x21d   :  { %v686_v63 = vmul.f32 %v685_v61, %v679_v60  ;;  %v1357_v1 = vadd.f32 %v1356_v62, %v1355_v59  ;;  %v1153_v59 = vld [vmem:[#allocation16 + $0x98] sm:$0xff]  ;;  %v1034_v60 = vld [vmem:[#allocation14 + $0x20] sm:$0xff] }
 0x21e   :  { %v1137_v61 = vld [vmem:[#allocation16 + $0x18] sm:$0xff] }
 0x21f   :  { %v687_v3 = vadd.f32 %v1357_v1, %v686_v63  ;;  %v1033_v62 = vld [vmem:[#allocation14 + $0x18] sm:$0xff]  ;;  %v1152_v63 = vld [vmem:[#allocation16 + $0x90] sm:$0xff] }
 0x220   :  { %v1032_v1 = vld [vmem:[#allocation14 + $0x10] sm:$0xff] }
 0x221   :  { %v693_v4 = vadd.f32 %v1298_v2, %v687_v3  ;;  %v1136_v2 = vld [vmem:[#allocation16 + $0x10] sm:$0xff]  ;;  %v1031_v3 = vld [vmem:[#allocation14 + $0x8] sm:$0xff] }
 0x223   :  { %v694_v6 = vmax.f32 %v693_v4, 0.0  ;;  %v1151_v4 = vld [vmem:[#allocation16 + $0x88] sm:$0xff] }
 0x225   :  { %v700_v8 = vmul.f32 %v1299_v5, %v694_v6  ;;  %v1030_v5 = vld [vmem:[#allocation14] sm:$0xff]  ;;  %v1135_v6 = vld [vmem:[#allocation16 + $0x8] sm:$0xff] }
 0x227   :  { %v706_v9 = vadd.f32 %v1300_v7, %v700_v8  ;;  %v1150_v7 = vld [vmem:[#allocation16 + $0x80] sm:$0xff] }
 0x228   :  { %v1134_v8 = vld [vmem:[#allocation16] sm:$0xff] }
 0x229   :  { %v707_v10 = vmul.f32 %v706_v9, %v706_v9 }
 0x22b   :  { %900 = vmatprep.mubr.f32.mxu1 %v707_v10  ;;  %971 = vmatprep.mubr.f32.mxu0 %v707_v10 }
 0x22c   :  { %901 = vmatmul.mubr.f32.vlgmr.msra.gmra.mxu1 %v706_v9  ;;  %972 = vmatmul.mubr.f32.vlgmr.msra.gmra.mxu0 %v706_v9  ;;  %v1303_v9 = vld [vmem:[#allocation17 + $0xf] ss:$0 sm:$0xff] }
 0x22d   :  { %1063 = vmatpush1.msra.mxu1 %v1060_v11  ;;  %1359 = vmatpush3.msra.mxu0 %v1149_v12  ;;  %v1301_v11 = vld [vmem:[#allocation17 + $0xd] ss:$0 sm:$0xff] }
 0x22e   :  { %1064 = vmatprep.subr.mxu1 %v1059_v13  ;;  %1360 = vmatprep.subr.mxu0 %v1164_v14  ;;  %v1302_v13 = vld [vmem:[#allocation17 + $0xe] ss:$0 sm:$0xff] }
 0x22f   :  { %1065 = vmatpush1.msra.mxu1 %v1058_v15  ;;  %1361 = vmatpush3.msra.mxu0 %v1148_v16  ;;  %v1307_v15 = vld [vmem:[#allocation17 + $0x13] ss:$0 sm:$0xff] }
 0x230   :  { %1066 = vmatprep.subr.mxu1 %v1057_v17  ;;  %1362 = vmatprep.subr.mxu0 %v1163_v18 }
 0x231   :  { %1067 = vmatpush1.msra.mxu1 %v1056_v19  ;;  %1363 = vmatpush3.msra.mxu0 %v1147_v20  ;;  %v1308_v20 = vld [vmem:[#allocation17 + $0x14] ss:$0 sm:$0xff] }
 0x232   :  { %1068 = vmatprep.subr.mxu1 %v1055_v21  ;;  %1364 = vmatprep.subr.mxu0 %v1162_v22 }
 0x233   :  { %1069 = vmatpush1.msra.mxu1 %v1054_v23  ;;  %1365 = vmatpush3.msra.mxu0 %v1146_v24  ;;  %v1304_v24 = vld [vmem:[#allocation17 + $0x10] ss:$0 sm:$0xff] }
 0x234   :  { %1070 = vmatprep.subr.mxu1 %v1053_v25  ;;  %1366 = vmatprep.subr.mxu0 %v1161_v26 }
 0x235   :  { %1071 = vmatpush1.msra.mxu1 %v1052_v27  ;;  %1367 = vmatpush3.msra.mxu0 %v1145_v28  ;;  %v1305_v28 = vld [vmem:[#allocation17 + $0x11] ss:$0 sm:$0xff] }
 0x236   :  { %1072 = vmatprep.subr.mxu1 %v1051_v29  ;;  %1368 = vmatprep.subr.mxu0 %v1160_v30  ;;  %v1306_v30 = vld [vmem:[#allocation17 + $0x12] ss:$0 sm:$0xff] }
 0x237   :  { %1073 = vmatpush1.msra.mxu1 %v1050_v31  ;;  %1369 = vmatpush3.msra.mxu0 %v1144_v32 }
 0x238   :  { %1074 = vmatprep.subr.mxu1 %v1049_v33  ;;  %1370 = vmatprep.subr.mxu0 %v1159_v34 }
 0x239   :  { %1075 = vmatpush1.msra.mxu1 %v1048_v35  ;;  %1126 = vmatprep.mubr.f32.mxu1 %v1692_v0  ;;  %v1041_v0 = vld [vmem:[#allocation14 + $0x58] sm:$0xff]  ;;  %v1309_v35 = vld [vmem:[#allocation17 + $0x15] ss:$0 sm:$0xff] }
 0x23a   :  { %1076 = vmatprep.subr.mxu1 %v1047_v36  ;;  %1371 = vmatpush3.msra.mxu0 %v1143_v38  ;;  %v1310_v36 = vld [vmem:[#allocation17 + $0x16] ss:$0 sm:$0xff] }
 0x23b   :  { %1077 = vmatpush1.msra.mxu1 %v1046_v37  ;;  %1372 = vmatprep.subr.mxu0 %v1158_v40 }
 0x23c   :  { %1078 = vmatprep.subr.mxu1 %v1045_v39  ;;  %1373 = vmatpush3.msra.mxu0 %v1142_v42 }
 0x23d   :  { %1079 = vmatpush1.msra.mxu1 %v1044_v41  ;;  %1374 = vmatprep.subr.mxu0 %v1157_v44  ;;  %v1311_v44 = vld [vmem:[#allocation17 + $0x17] ss:$0 sm:$0xff] }
 0x23e   :  { %1080 = vmatprep.subr.mxu1 %v1043_v43  ;;  %1375 = vmatpush3.msra.mxu0 %v1141_v46 }
 0x23f   :  { %1081 = vmatpush1.msra.mxu1 %v1042_v45  ;;  %1376 = vmatprep.subr.mxu0 %v1156_v47 }
 0x240   :  { %1082 = vmatprep.subr.mxu1 %v1041_v0  ;;  %1377 = vmatpush3.msra.mxu0 %v1140_v49 }
 0x241   :  { %1083 = vmatpush1.msra.mxu1 %v1040_v48  ;;  %1378 = vmatprep.subr.mxu0 %v1155_v51 }
 0x242   :  { %1084 = vmatprep.subr.mxu1 %v1039_v50  ;;  %1379 = vmatpush3.msra.mxu0 %v1139_v53 }
 0x243   :  { %1085 = vmatpush1.msra.mxu1 %v1038_v52  ;;  %1380 = vmatprep.subr.mxu0 %v1154_v55 }
 0x244   :  { %1086 = vmatprep.subr.mxu1 %v1037_v54  ;;  %1381 = vmatpush3.msra.mxu0 %v1138_v57 }
 0x245   :  { %1087 = vmatpush1.msra.mxu1 %v1036_v56  ;;  %1382 = vmatprep.subr.mxu0 %v1153_v59 }
 0x246   :  { %1088 = vmatprep.subr.mxu1 %v1035_v58  ;;  %1383 = vmatpush3.msra.mxu0 %v1137_v61 }
 0x247   :  { %1089 = vmatpush1.msra.mxu1 %v1034_v60  ;;  %1384 = vmatprep.subr.mxu0 %v1152_v63 }
 0x248   :  { %1090 = vmatprep.subr.mxu1 %v1033_v62  ;;  %1385 = vmatpush3.msra.mxu0 %v1136_v2 }
 0x249   :  { %1091 = vmatpush1.msra.mxu1 %v1032_v1  ;;  %1386 = vmatprep.subr.mxu0 %v1151_v4 }
 0x24a   :  { %1092 = vmatprep.subr.mxu1 %v1031_v3  ;;  %1387 = vmatpush3.msra.mxu0 %v1135_v6 }
 0x24b   :  { %1093 = vmatpush1.msra.mxu1 %v1030_v5  ;;  %1388 = vmatprep.subr.mxu0 %v1150_v7 }
 0x24c   :  { %1389 = vmatpush3.msra.mxu0 %v1134_v8 }
 0x2ec   :  { %v902_v10 = vpop.f32.mrf.mxu1  ;;  %v973_v12 = vpop.f32.mrf.mxu0 }
 0x2ed   :  { %v995_v14 = vadd.f32 %v1303_v9, %v973_v12  ;;  %v983_v17 = vadd.f32 %v1301_v11, %v902_v10 }
 0x2ee   :  { %v904_v16 = vpop.f32.mrf.mxu1  ;;  %v975_v23 = vpop.f32.mrf.mxu0 }
 0x2ef   :  { %v1005_v18 = vmax.f32 %v995_v14, 0.0  ;;  %v989_v19 = vadd.f32 %v1302_v13, %v904_v16 }
 0x2f1   :  { %v1023_v21 = vmul.f32 %v1307_v15, %v1005_v18  ;;  %v996_v22 = vmul.f32 %v989_v19, %v983_v17 }
 0x2f3   :  { %v997_v25 = vadd.f32 %v996_v22, %v975_v23  ;;  %v1029_v26 = vadd.f32 %v1308_v20, %v1023_v21 }
 0x2f5   :  { %v1003_v27 = vadd.f32 %v1304_v24, %v997_v25  ;;  %1230 = vmatprep.mubr.f32.mxu0 %v1029_v26 }
 0x2f7   :  { %v1004_v29 = vmax.f32 %v1003_v27, 0.0 }
 0x2f9   :  { %v1011_v31 = vmul.f32 %v1305_v28, %v1004_v29 }
 0x2fb   :  { %v1017_v32 = vadd.f32 %v1306_v30, %v1011_v31 }
 0x2fd   :  { %1127 = vmatmul.mubr.f32.vlgmr.msra.gmra.mxu1 %v1017_v32  ;;  %v1133_v33 = vmul.f32 %v1017_v32, %v1017_v32 }
 0x2ff   :  { %1231 = vmatmul.mubr.f32.vlgmr.msra.gmra.mxu0 %v1133_v33 }
 0x3bd   :  { %v1128_v34 = vpop.f32.mrf.mxu1 }
 0x3be   :  { %v1241_v39 = vadd.f32 %v1309_v35, %v1128_v34 }
 0x3bf   :  { %v1130_v37 = vpop.f32.mrf.mxu1  ;;  %v1390_v38 = vpop.f32.mrf.mxu0 }
 0x3c0   :  { %v1247_v40 = vadd.f32 %v1310_v36, %v1130_v37 }
 0x3c1   :  { %v1391_v41 = vpop.f32.mrf.mxu0 }
 0x3c2   :  { %v1248_v42 = vmul.f32 %v1247_v40, %v1241_v39  ;;  %v1392_v43 = vadd.f32 %v1391_v41, %v1390_v38 }
 0x3c4   :  { %v1249_v45 = vadd.f32 %v1392_v43, %v1248_v42 }
 0x3c6   :  { %v1255_v46 = vadd.f32 %v1311_v44, %v1249_v45 }
 0x3c8   :  { %v1312_v0 = vmul.f32 -1.442695, %v1255_v46 }
 0x3ca   :  { %1436 = vpow2.f32 %v1312_v0 }
 0x3d7   :  { %v1437_v47 = vpop.eup %1436 }
 0x3d8   :  { %v1259_v48 = vadd.f32 1.0, %v1437_v47 }
 0x3da   :  { %1438 = vrcp.f32 %v1259_v48 }
 0x3e7   :  { %v1439_v49 = vpop.eup %1438 }
 0x3e8   :  { %1262 = vst [vmem:[#allocation19] sm:$0xff] %v1439_v49 }
 0x3e9   :  { %1651 = shalt.err (!%p1648_p12)
}
 0x3ea   :  { %1272 = dma.vmem_to_hbm [thread:$0]  %s1270_s9, 128, %s1829_s10, [#allocation4]  }
 0x3eb   :  { %1672 = dma.done.wait [#allocation4], 128  }
 0x3ec   :  { %1673 = vsyncadd [#allocation4], 4294967168 }
 0x3ed   :  { %1276 = vsyncpa [#allocation3], 1 }
 0x3ee   :  { %1277 = vsyncpa [#allocation6], 1 }
 0x3ef   :  { %1278 = vsyncpa [#allocation9], 1 }
 0x3f0   :  { %1279 = vsyncpa [#allocation12], 1 }
 0x3f1   :  { %1280 = vsyncpa [#allocation15], 1 }
 0x3f2   :  { %1281 = vsyncpa [#allocation18], 1 }
 0x3f3   :  { %1282 = vsyncpa [#allocation4], 1 }

</bundles_post_ra>
